<compile_context>
chip_gen: v6e
topology: v6e:2x2x1
jax: 0.10.0
libtpu: 0.0.40
codegen_flags: <defaults>
</compile_context>

<pallas_src>
import functools

import numpy as np
import jax
import jax.numpy as jnp
from jax import lax
from jax.experimental import pallas as pl
from jax.experimental.pallas import tpu as pltpu


def gsf_gnn_kernel(suT_ref, h_ref, negb_ref, rhs_ref, wv_ref,
                   w1h_ref, w1m_ref, b1_ref, w2_ref, b2_ref,
                   out_ref, *, num_heads):
    f32, bf16 = jnp.float32, jnp.bfloat16

    h_dst = h_ref[...]                       # [TM, D] bf16   h = fc(x), this tile's dst rows
    suT = suT_ref[...]                       # [H, N]  f32    attn_u(h) for all src (hoisted)

    # svT[h, t] = <Wv[h, :], h_dst[t, :]>  -- one NT dot_general, no per-head slices.
    svT = lax.dot_general(wv_ref[...], h_dst,
                          dimension_numbers=(((1,), (1,)), ((), ())),
                          preferred_element_type=f32)            # [H, TM]

    # scores[h, t, n] = leaky_relu(su[n, h] + sv[t, h]) + mask(t, n)
    s3 = svT[:, :, None] + suT[:, None, :]                       # [H, TM, N]
    s3 = jnp.maximum(s3, 0.2 * s3)                               # LeakyReLU(0.2)
    s3 = s3 + negb_ref[...].astype(f32)[None, :, :]              # additive -1e30 mask (bf16 in)

    # edge softmax over src (last axis); non-edges underflow to exactly 0.
    m3 = jnp.max(s3, axis=-1, keepdims=True)
    e3 = jnp.exp(s3 - m3)
    d3 = jnp.maximum(jnp.sum(e3, axis=-1, keepdims=True), 1e-30)
    r3 = pl.reciprocal(d3, approx=True)                          # [H, TM, 1]  (EUP)
    e3b = e3.astype(bf16)                                        # cast hoisted out of the loop

    # Per-head message accumulated into one [TM, D] buffer.
    # rhs_ref[h] = h * lane_mask(h)  (head h owns lanes {j : j % H == h}), built host-side.
    msg = jnp.zeros(h_dst.shape, f32)
    for hd in range(num_heads):
        m_h = jnp.dot(e3b[hd], rhs_ref[hd], preferred_element_type=f32)   # [TM, D]
        msg = msg + m_h * r3[hd]                                 # normalize after the matmul

    # FFN; W1 split host-side so the [h, msg] lane concat disappears.
    y = (jnp.dot(h_dst, w1h_ref[...], preferred_element_type=f32)
         + jnp.dot(msg.astype(bf16), w1m_ref[...], preferred_element_type=f32)
         + b1_ref[...])
    # tanh-form GELU (EUP tanh); |diff| vs exact erf GELU < ~3e-3.
    y = 0.5 * y * (1.0 + jnp.tanh(0.7978845608028654 * (y + 0.044715 * y * y * y)))
    out_ref[...] = (jnp.dot(y.astype(bf16), w2_ref[...], preferred_element_type=f32)
                    + b2_ref[...])


def gsf_gnn_layer(x, adj, params, num_heads, *, block_rows=None):
    """Host wrapper: hoists fc/attn_u, builds masks/split weights, launches the kernel."""
    (Wfc, bfc, Wu, bu, Wv, W1, b1, W2, b2) = params   # torch convention: W is [out, in]
    N, dim = x.shape
    assert dim % num_heads == 0
    hidden = W1.shape[0]

    f32, bf16 = jnp.float32, jnp.bfloat16
    x = jnp.asarray(x, f32)
    Wfc = jnp.asarray(Wfc, f32); bfc = jnp.asarray(bfc, f32)
    Wu = jnp.asarray(Wu, f32); bu = jnp.asarray(bu, f32)
    Wv = jnp.asarray(Wv, f32)
    W1 = jnp.asarray(W1, f32); b1 = jnp.asarray(b1, f32)
    W2 = jnp.asarray(W2, f32); b2 = jnp.asarray(b2, f32)

    # Tile-invariant pieces hoisted to plain XLA (single matmuls over all nodes).
    h = x @ Wfc.T + bfc                                   # [N, D] f32   h = fc(x)
    suT = Wu @ h.T + bu[:, None]                          # [H, N] f32   attn_u(h), transposed
    h_bf = h.astype(bf16)                                 # [N, D] bf16  kernel input

    # Per-head lane-masked copies of h (original strided head layout: lane j -> head j % H).
    head_mask = (jnp.arange(dim)[None, :] % num_heads
                 == jnp.arange(num_heads)[:, None]).astype(f32)            # [H, D]
    rhs_msg = (h[None, :, :] * head_mask[:, None, :]).astype(bf16)         # [H, N, D]

    # Dense adjacency -> additive mask; bf16 halves the only O(N^2) DMA stream.
    neg_bias = jnp.where(jnp.asarray(adj) > 0.0, 0.0, -1e30).astype(bf16)  # [N, N]

    wv_k = Wv.astype(bf16)                                # [H, D]  (attn_linear_v has no bias)
    w1h_k = W1.T[:dim, :].astype(bf16)                    # [D, hidden]  acts on h
    w1m_k = W1.T[dim:, :].astype(bf16)                    # [D, hidden]  acts on msg
    b1_k = b1[None, :]                                    # [1, hidden] f32
    w2_k = W2.T.astype(bf16)                              # [hidden, D]
    b2_k = b2[None, :]                                    # [1, D] f32

    if block_rows is None:
        # 1 tile on single-TC chips (v5e/v6e); 2 tiles on v7x (2 TensorCores/chip).
        kind = jax.devices()[0].device_kind.lower()
        n_tiles = 2 if ("v7" in kind or "7x" in kind) else 1
        block_rows = N // n_tiles
        if N % n_tiles != 0 or block_rows % 8 != 0:
            block_rows = N
    assert N % block_rows == 0 and (block_rows % 8 == 0 or block_rows == N)

    grid = (N // block_rows,)

    def const(shape):
        return pl.BlockSpec(shape, lambda i, _s=shape: (0,) * len(_s))

    kernel = functools.partial(gsf_gnn_kernel, num_heads=num_heads)
    return pl.pallas_call(
        kernel,
        out_shape=jax.ShapeDtypeStruct((N, dim), f32),
        grid=grid,
        in_specs=[
            const((num_heads, N)),                               # suT
            pl.BlockSpec((block_rows, dim), lambda i: (i, 0)),   # h, dst-row tile
            pl.BlockSpec((block_rows, N), lambda i: (i, 0)),     # neg_bias tile
            const((num_heads, N, dim)),                          # masked-h message RHS
            const((num_heads, dim)),                             # wv
            const((dim, hidden)), const((dim, hidden)), const((1, hidden)),  # w1h, w1m, b1
            const((hidden, dim)), const((1, dim)),               # w2, b2
        ],
        out_specs=pl.BlockSpec((block_rows, dim), lambda i: (i, 0)),
        compiler_params=pltpu.CompilerParams(dimension_semantics=("parallel",)),
    )(suT, h_bf, neg_bias, rhs_msg, wv_k, w1h_k, w1m_k, b1_k, w2_k, b2_k)


def reference(x, adj, params, num_heads):
    """Pure-JAX reference in the original (torch) layout, f32, exact GELU."""
    (Wfc, bfc, Wu, bu, Wv, W1, b1, W2, b2) = params
    N, dim = x.shape
    head_dim = dim // num_heads
    h = x @ Wfc.T + bfc
    su = h @ Wu.T + bu                                # [N, H]
    sv = h @ Wv.T                                     # [N, H]
    scores = su[None, :, :] + sv[:, None, :]          # [dst, src, H]
    scores = jnp.where(scores >= 0.0, scores, 0.2 * scores)
    mask = (adj > 0.0)[:, :, None]
    scores = jnp.where(mask, scores, -jnp.inf)
    attn = jax.nn.softmax(scores, axis=1)
    attn = jnp.where(mask, attn, 0.0)
    xr = h.reshape(N, head_dim, num_heads)
    msg = jnp.einsum('tsh,sdh->tdh', attn, xr).reshape(N, dim)
    cat = jnp.concatenate([h, msg], axis=1)
    y = cat @ W1.T + b1
    y = jax.nn.gelu(y, approximate=False)
    y = y @ W2.T + b2
    return y


if __name__ == "__main__":
    N, dim, num_heads = 64, 32, 4          # num_nodes, dim, heads (dim % heads == 0)
    hidden_mult = 2
    hidden = dim * hidden_mult
    input_dim = 2 * dim                    # use_combinations=False -> multiplier 2

    key = jax.random.PRNGKey(0)
    ks = jax.random.split(key, 12)

    def init(k, shape, fan_in):
        return jax.random.uniform(k, shape, jnp.float32, -1.0, 1.0) / jnp.sqrt(fan_in)

    Wfc = init(ks[0], (dim, dim), dim)
    bfc = init(ks[1], (dim,), dim)
    Wu = init(ks[2], (num_heads, dim), dim)
    bu = init(ks[3], (num_heads,), dim)
    Wv = init(ks[4], (num_heads, dim), dim)          # attn_linear_v has no bias
    W1 = init(ks[5], (hidden, input_dim), input_dim)
    b1 = init(ks[6], (hidden,), input_dim)
    W2 = init(ks[7], (dim, hidden), hidden)
    b2 = init(ks[8], (dim,), hidden)
    params = (Wfc, bfc, Wu, bu, Wv, W1, b1, W2, b2)

    x = jax.random.normal(ks[9], (N, dim), jnp.float32)

    # Random dense adjacency adj[dst, src]; add a ring so every node has
    # in-degree >= 1 (edge_softmax precondition).
    rand_edges = (jax.random.uniform(ks[10], (N, N)) < 0.15).astype(jnp.float32)
    ring = jnp.roll(jnp.eye(N, dtype=jnp.float32), -1, axis=1)   # edge (i-1) -> i
    adj = jnp.clip(rand_edges + ring, 0.0, 1.0)

    out = gsf_gnn_layer(x, adj, params, num_heads)
    out = jax.block_until_ready(out)

    ref = reference(x, adj, params, num_heads)
    assert out.shape == (N, dim)
    np.testing.assert_allclose(np.asarray(out), np.asarray(ref), rtol=5e-2, atol=5e-2)
    print("KERNEL_OK")
</pallas_src>

<mosaic_0001>
module attributes {stable_mosaic.version = 11 : i64} {
  func.func @gsf_gnn_kernel(%arg0: i32, %arg1: memref<4x64xf32, #tpu.memory_space<vmem>>, %arg2: memref<64x32xbf16, #tpu.memory_space<vmem>>, %arg3: memref<64x64xbf16, #tpu.memory_space<vmem>>, %arg4: memref<4x64x32xbf16, #tpu.memory_space<vmem>>, %arg5: memref<4x32xbf16, #tpu.memory_space<vmem>>, %arg6: memref<32x64xbf16, #tpu.memory_space<vmem>>, %arg7: memref<32x64xbf16, #tpu.memory_space<vmem>>, %arg8: memref<1x64xf32, #tpu.memory_space<vmem>>, %arg9: memref<64x32xbf16, #tpu.memory_space<vmem>>, %arg10: memref<1x32xf32, #tpu.memory_space<vmem>>, %arg11: memref<64x32xf32, #tpu.memory_space<vmem>>) attributes {dimension_semantics = [#tpu.dimension_semantics<parallel>], iteration_bounds = array<i64: 1>, scalar_prefetch = 0 : i64, scratch_operands = 0 : i64, tpu.core_type = #tpu.core_type<tc>, window_params = [{pipeline_mode = #tpu.pipeline_mode<synchronous>, transform_indices = @transform_0, window_bounds = array<i64: 4, 64>}, {transform_indices = @transform_1, window_bounds = array<i64: 64, 32>}, {transform_indices = @transform_2, window_bounds = array<i64: 64, 64>}, {pipeline_mode = #tpu.pipeline_mode<synchronous>, transform_indices = @transform_3, window_bounds = array<i64: 4, 64, 32>}, {pipeline_mode = #tpu.pipeline_mode<synchronous>, transform_indices = @transform_4, window_bounds = array<i64: 4, 32>}, {pipeline_mode = #tpu.pipeline_mode<synchronous>, transform_indices = @transform_5, window_bounds = array<i64: 32, 64>}, {pipeline_mode = #tpu.pipeline_mode<synchronous>, transform_indices = @transform_6, window_bounds = array<i64: 32, 64>}, {pipeline_mode = #tpu.pipeline_mode<synchronous>, transform_indices = @transform_7, window_bounds = array<i64: 1, 64>}, {pipeline_mode = #tpu.pipeline_mode<synchronous>, transform_indices = @transform_8, window_bounds = array<i64: 64, 32>}, {pipeline_mode = #tpu.pipeline_mode<synchronous>, transform_indices = @transform_9, window_bounds = array<i64: 1, 32>}, {transform_indices = @transform_10, window_bounds = array<i64: 64, 32>}]} {
    %c0 = arith.constant 0 : index
    %c0_0 = arith.constant 0 : index
    %0 = vector.load %arg2[%c0, %c0_0] : memref<64x32xbf16, #tpu.memory_space<vmem>>, vector<64x32xbf16>
    %c0_1 = arith.constant 0 : index
    %c0_2 = arith.constant 0 : index
    %1 = vector.load %arg1[%c0_1, %c0_2] : memref<4x64xf32, #tpu.memory_space<vmem>>, vector<4x64xf32>
    %c0_3 = arith.constant 0 : index
    %c0_4 = arith.constant 0 : index
    %2 = vector.load %arg5[%c0_3, %c0_4] : memref<4x32xbf16, #tpu.memory_space<vmem>>, vector<4x32xbf16>
    %cst = arith.constant dense<0.000000e+00> : vector<4x64xf32>
    %3 = tpu.matmul %2, %0, %cst {dimension_numbers = #tpu.dot_dimension_numbers<[1], [1], [0], [0], [0, 0, 1, 0], [], []>} : vector<4x32xbf16>, vector<64x32xbf16>, vector<4x64xf32> -> vector<4x64xf32>
    %4 = vector.shape_cast %3 : vector<4x64xf32> to vector<4x64x1xf32>
    %5 = vector.shape_cast %1 : vector<4x64xf32> to vector<4x1x64xf32>
    %6 = vector.broadcast %4 : vector<4x64x1xf32> to vector<4x64x64xf32>
    %7 = vector.broadcast %5 : vector<4x1x64xf32> to vector<4x64x64xf32>
    %8 = arith.addf %6, %7 : vector<4x64x64xf32>
    %cst_5 = arith.constant 2.000000e-01 : f32
    %9 = vector.broadcast %cst_5 : f32 to vector<4x64x64xf32>
    %10 = arith.mulf %9, %8 : vector<4x64x64xf32>
    %11 = arith.maximumf %8, %10 : vector<4x64x64xf32>
    %c0_6 = arith.constant 0 : index
    %c0_7 = arith.constant 0 : index
    %12 = vector.load %arg3[%c0_6, %c0_7] : memref<64x64xbf16, #tpu.memory_space<vmem>>, vector<64x64xbf16>
    %13 = arith.extf %12 : vector<64x64xbf16> to vector<64x64xf32>
    %14 = vector.shape_cast %13 : vector<64x64xf32> to vector<1x64x64xf32>
    %15 = vector.broadcast %14 : vector<1x64x64xf32> to vector<4x64x64xf32>
    %16 = arith.addf %11, %15 : vector<4x64x64xf32>
    %cst_8 = arith.constant dense<0xFF800000> : vector<4x64xf32>
    %17 = vector.multi_reduction <maximumf>, %16, %cst_8 [2] : vector<4x64x64xf32> to vector<4x64xf32>
    %18 = vector.shape_cast %17 : vector<4x64xf32> to vector<4x64x1xf32>
    %19 = vector.broadcast %18 : vector<4x64x1xf32> to vector<4x64x64xf32>
    %20 = arith.subf %16, %19 : vector<4x64x64xf32>
    %21 = math.exp %20 : vector<4x64x64xf32>
    %cst_9 = arith.constant dense<0.000000e+00> : vector<4x64xf32>
    %22 = vector.multi_reduction <add>, %21, %cst_9 [2] : vector<4x64x64xf32> to vector<4x64xf32>
    %23 = vector.shape_cast %22 : vector<4x64xf32> to vector<4x64x1xf32>
    %cst_10 = arith.constant 1.000000e-30 : f32
    %24 = vector.broadcast %cst_10 : f32 to vector<4x64x1xf32>
    %25 = arith.maximumf %23, %24 : vector<4x64x1xf32>
    %26 = tpu.reciprocal %25 {approx = true} : vector<4x64x1xf32> -> vector<4x64x1xf32>
    %27 = arith.truncf %21 : vector<4x64x64xf32> to vector<4x64x64xbf16>
    %cst_11 = arith.constant 0.000000e+00 : f32
    %28 = vector.broadcast %cst_11 : f32 to vector<64x32xf32>
    %29 = vector.extract_strided_slice %27 {offsets = [0, 0, 0], sizes = [1, 64, 64], strides = [1, 1, 1]} : vector<4x64x64xbf16> to vector<1x64x64xbf16>
    %30 = vector.shape_cast %29 : vector<1x64x64xbf16> to vector<64x64xbf16>
    %c0_12 = arith.constant 0 : index
    %c0_13 = arith.constant 0 : index
    %c0_14 = arith.constant 0 : index
    %31 = vector.load %arg4[%c0_12, %c0_13, %c0_14] : memref<4x64x32xbf16, #tpu.memory_space<vmem>>, vector<1x64x32xbf16>
    %32 = vector.shape_cast %31 : vector<1x64x32xbf16> to vector<64x32xbf16>
    %cst_15 = arith.constant dense<0.000000e+00> : vector<64x32xf32>
    %33 = tpu.matmul %30, %32, %cst_15 {dimension_numbers = #tpu.dot_dimension_numbers<[1], [0], [0], [1], [0, 0, 1, 1], [], []>} : vector<64x64xbf16>, vector<64x32xbf16>, vector<64x32xf32> -> vector<64x32xf32>
    %34 = vector.extract_strided_slice %26 {offsets = [0, 0, 0], sizes = [1, 64, 1], strides = [1, 1, 1]} : vector<4x64x1xf32> to vector<1x64x1xf32>
    %35 = vector.shape_cast %34 : vector<1x64x1xf32> to vector<64x1xf32>
    %36 = vector.broadcast %35 : vector<64x1xf32> to vector<64x32xf32>
    %37 = arith.mulf %33, %36 : vector<64x32xf32>
    %38 = arith.addf %28, %37 : vector<64x32xf32>
    %39 = vector.extract_strided_slice %27 {offsets = [1, 0, 0], sizes = [1, 64, 64], strides = [1, 1, 1]} : vector<4x64x64xbf16> to vector<1x64x64xbf16>
    %40 = vector.shape_cast %39 : vector<1x64x64xbf16> to vector<64x64xbf16>
    %c1 = arith.constant 1 : index
    %c0_16 = arith.constant 0 : index
    %c0_17 = arith.constant 0 : index
    %41 = vector.load %arg4[%c1, %c0_16, %c0_17] : memref<4x64x32xbf16, #tpu.memory_space<vmem>>, vector<1x64x32xbf16>
    %42 = vector.shape_cast %41 : vector<1x64x32xbf16> to vector<64x32xbf16>
    %cst_18 = arith.constant dense<0.000000e+00> : vector<64x32xf32>
    %43 = tpu.matmul %40, %42, %cst_18 {dimension_numbers = #tpu.dot_dimension_numbers<[1], [0], [0], [1], [0, 0, 1, 1], [], []>} : vector<64x64xbf16>, vector<64x32xbf16>, vector<64x32xf32> -> vector<64x32xf32>
    %44 = vector.extract_strided_slice %26 {offsets = [1, 0, 0], sizes = [1, 64, 1], strides = [1, 1, 1]} : vector<4x64x1xf32> to vector<1x64x1xf32>
    %45 = vector.shape_cast %44 : vector<1x64x1xf32> to vector<64x1xf32>
    %46 = vector.broadcast %45 : vector<64x1xf32> to vector<64x32xf32>
    %47 = arith.mulf %43, %46 : vector<64x32xf32>
    %48 = arith.addf %38, %47 : vector<64x32xf32>
    %49 = vector.extract_strided_slice %27 {offsets = [2, 0, 0], sizes = [1, 64, 64], strides = [1, 1, 1]} : vector<4x64x64xbf16> to vector<1x64x64xbf16>
    %50 = vector.shape_cast %49 : vector<1x64x64xbf16> to vector<64x64xbf16>
    %c2 = arith.constant 2 : index
    %c0_19 = arith.constant 0 : index
    %c0_20 = arith.constant 0 : index
    %51 = vector.load %arg4[%c2, %c0_19, %c0_20] : memref<4x64x32xbf16, #tpu.memory_space<vmem>>, vector<1x64x32xbf16>
    %52 = vector.shape_cast %51 : vector<1x64x32xbf16> to vector<64x32xbf16>
    %cst_21 = arith.constant dense<0.000000e+00> : vector<64x32xf32>
    %53 = tpu.matmul %50, %52, %cst_21 {dimension_numbers = #tpu.dot_dimension_numbers<[1], [0], [0], [1], [0, 0, 1, 1], [], []>} : vector<64x64xbf16>, vector<64x32xbf16>, vector<64x32xf32> -> vector<64x32xf32>
    %54 = vector.extract_strided_slice %26 {offsets = [2, 0, 0], sizes = [1, 64, 1], strides = [1, 1, 1]} : vector<4x64x1xf32> to vector<1x64x1xf32>
    %55 = vector.shape_cast %54 : vector<1x64x1xf32> to vector<64x1xf32>
    %56 = vector.broadcast %55 : vector<64x1xf32> to vector<64x32xf32>
    %57 = arith.mulf %53, %56 : vector<64x32xf32>
    %58 = arith.addf %48, %57 : vector<64x32xf32>
    %59 = vector.extract_strided_slice %27 {offsets = [3, 0, 0], sizes = [1, 64, 64], strides = [1, 1, 1]} : vector<4x64x64xbf16> to vector<1x64x64xbf16>
    %60 = vector.shape_cast %59 : vector<1x64x64xbf16> to vector<64x64xbf16>
    %c3 = arith.constant 3 : index
    %c0_22 = arith.constant 0 : index
    %c0_23 = arith.constant 0 : index
    %61 = vector.load %arg4[%c3, %c0_22, %c0_23] : memref<4x64x32xbf16, #tpu.memory_space<vmem>>, vector<1x64x32xbf16>
    %62 = vector.shape_cast %61 : vector<1x64x32xbf16> to vector<64x32xbf16>
    %cst_24 = arith.constant dense<0.000000e+00> : vector<64x32xf32>
    %63 = tpu.matmul %60, %62, %cst_24 {dimension_numbers = #tpu.dot_dimension_numbers<[1], [0], [0], [1], [0, 0, 1, 1], [], []>} : vector<64x64xbf16>, vector<64x32xbf16>, vector<64x32xf32> -> vector<64x32xf32>
    %64 = vector.extract_strided_slice %26 {offsets = [3, 0, 0], sizes = [1, 64, 1], strides = [1, 1, 1]} : vector<4x64x1xf32> to vector<1x64x1xf32>
    %65 = vector.shape_cast %64 : vector<1x64x1xf32> to vector<64x1xf32>
    %66 = vector.broadcast %65 : vector<64x1xf32> to vector<64x32xf32>
    %67 = arith.mulf %63, %66 : vector<64x32xf32>
    %68 = arith.addf %58, %67 : vector<64x32xf32>
    %c0_25 = arith.constant 0 : index
    %c0_26 = arith.constant 0 : index
    %69 = vector.load %arg6[%c0_25, %c0_26] : memref<32x64xbf16, #tpu.memory_space<vmem>>, vector<32x64xbf16>
    %cst_27 = arith.constant dense<0.000000e+00> : vector<64x64xf32>
    %70 = tpu.matmul %0, %69, %cst_27 {dimension_numbers = #tpu.dot_dimension_numbers<[1], [0], [0], [1], [0, 0, 1, 1], [], []>} : vector<64x32xbf16>, vector<32x64xbf16>, vector<64x64xf32> -> vector<64x64xf32>
    %71 = arith.truncf %68 : vector<64x32xf32> to vector<64x32xbf16>
    %c0_28 = arith.constant 0 : index
    %c0_29 = arith.constant 0 : index
    %72 = vector.load %arg7[%c0_28, %c0_29] : memref<32x64xbf16, #tpu.memory_space<vmem>>, vector<32x64xbf16>
    %cst_30 = arith.constant dense<0.000000e+00> : vector<64x64xf32>
    %73 = tpu.matmul %71, %72, %cst_30 {dimension_numbers = #tpu.dot_dimension_numbers<[1], [0], [0], [1], [0, 0, 1, 1], [], []>} : vector<64x32xbf16>, vector<32x64xbf16>, vector<64x64xf32> -> vector<64x64xf32>
    %74 = arith.addf %70, %73 : vector<64x64xf32>
    %c0_31 = arith.constant 0 : index
    %c0_32 = arith.constant 0 : index
    %75 = vector.load %arg8[%c0_31, %c0_32] : memref<1x64xf32, #tpu.memory_space<vmem>>, vector<1x64xf32>
    %76 = vector.broadcast %75 : vector<1x64xf32> to vector<64x64xf32>
    %77 = arith.addf %74, %76 : vector<64x64xf32>
    %cst_33 = arith.constant 5.000000e-01 : f32
    %78 = vector.broadcast %cst_33 : f32 to vector<64x64xf32>
    %79 = arith.mulf %78, %77 : vector<64x64xf32>
    %cst_34 = arith.constant 4.471500e-02 : f32
    %80 = vector.broadcast %cst_34 : f32 to vector<64x64xf32>
    %81 = arith.mulf %80, %77 : vector<64x64xf32>
    %82 = arith.mulf %81, %77 : vector<64x64xf32>
    %83 = arith.mulf %82, %77 : vector<64x64xf32>
    %84 = arith.addf %77, %83 : vector<64x64xf32>
    %cst_35 = arith.constant 0.797884583 : f32
    %85 = vector.broadcast %cst_35 : f32 to vector<64x64xf32>
    %86 = arith.mulf %85, %84 : vector<64x64xf32>
    %87 = math.tanh %86 : vector<64x64xf32>
    %cst_36 = arith.constant 1.000000e+00 : f32
    %88 = vector.broadcast %cst_36 : f32 to vector<64x64xf32>
    %89 = arith.addf %88, %87 : vector<64x64xf32>
    %90 = arith.mulf %79, %89 : vector<64x64xf32>
    %91 = arith.truncf %90 : vector<64x64xf32> to vector<64x64xbf16>
    %c0_37 = arith.constant 0 : index
    %c0_38 = arith.constant 0 : index
    %92 = vector.load %arg9[%c0_37, %c0_38] : memref<64x32xbf16, #tpu.memory_space<vmem>>, vector<64x32xbf16>
    %cst_39 = arith.constant dense<0.000000e+00> : vector<64x32xf32>
    %93 = tpu.matmul %91, %92, %cst_39 {dimension_numbers = #tpu.dot_dimension_numbers<[1], [0], [0], [1], [0, 0, 1, 1], [], []>} : vector<64x64xbf16>, vector<64x32xbf16>, vector<64x32xf32> -> vector<64x32xf32>
    %c0_40 = arith.constant 0 : index
    %c0_41 = arith.constant 0 : index
    %94 = vector.load %arg10[%c0_40, %c0_41] : memref<1x32xf32, #tpu.memory_space<vmem>>, vector<1x32xf32>
    %95 = vector.broadcast %94 : vector<1x32xf32> to vector<64x32xf32>
    %96 = arith.addf %93, %95 : vector<64x32xf32>
    %c0_42 = arith.constant 0 : index
    %c0_43 = arith.constant 0 : index
    %97 = vector.load %arg11[%c0_42, %c0_43] : memref<64x32xf32, #tpu.memory_space<vmem>>, vector<64x32xf32>
    tpu.vector_store %arg11[%c0_42, %c0_43], %96 {strides = array<i32>} : memref<64x32xf32, #tpu.memory_space<vmem>>, vector<64x32xf32>,
    return
  }
  func.func @transform_0(%arg0: i32) -> (i32, i32) {
    %c0_i32 = arith.constant 0 : i32
    %c0_i32_0 = arith.constant 0 : i32
    %c0_i32_1 = arith.constant 0 : i32
    return %c0_i32, %c0_i32_0 : i32, i32
  }
  func.func @transform_1(%arg0: i32) -> (i32, i32) {
    %c0_i32 = arith.constant 0 : i32
    %c0_i32_0 = arith.constant 0 : i32
    return %arg0, %c0_i32 : i32, i32
  }
  func.func @transform_2(%arg0: i32) -> (i32, i32) {
    %c0_i32 = arith.constant 0 : i32
    %c0_i32_0 = arith.constant 0 : i32
    return %arg0, %c0_i32 : i32, i32
  }
  func.func @transform_3(%arg0: i32) -> (i32, i32, i32) {
    %c0_i32 = arith.constant 0 : i32
    %c0_i32_0 = arith.constant 0 : i32
    %c0_i32_1 = arith.constant 0 : i32
    %c0_i32_2 = arith.constant 0 : i32
    return %c0_i32, %c0_i32_0, %c0_i32_1 : i32, i32, i32
  }
  func.func @transform_4(%arg0: i32) -> (i32, i32) {
    %c0_i32 = arith.constant 0 : i32
    %c0_i32_0 = arith.constant 0 : i32
    %c0_i32_1 = arith.constant 0 : i32
    return %c0_i32, %c0_i32_0 : i32, i32
  }
  func.func @transform_5(%arg0: i32) -> (i32, i32) {
    %c0_i32 = arith.constant 0 : i32
    %c0_i32_0 = arith.constant 0 : i32
    %c0_i32_1 = arith.constant 0 : i32
    return %c0_i32, %c0_i32_0 : i32, i32
  }
  func.func @transform_6(%arg0: i32) -> (i32, i32) {
    %c0_i32 = arith.constant 0 : i32
    %c0_i32_0 = arith.constant 0 : i32
    %c0_i32_1 = arith.constant 0 : i32
    return %c0_i32, %c0_i32_0 : i32, i32
  }
  func.func @transform_7(%arg0: i32) -> (i32, i32) {
    %c0_i32 = arith.constant 0 : i32
    %c0_i32_0 = arith.constant 0 : i32
    %c0_i32_1 = arith.constant 0 : i32
    return %c0_i32, %c0_i32_0 : i32, i32
  }
  func.func @transform_8(%arg0: i32) -> (i32, i32) {
    %c0_i32 = arith.constant 0 : i32
    %c0_i32_0 = arith.constant 0 : i32
    %c0_i32_1 = arith.constant 0 : i32
    return %c0_i32, %c0_i32_0 : i32, i32
  }
  func.func @transform_9(%arg0: i32) -> (i32, i32) {
    %c0_i32 = arith.constant 0 : i32
    %c0_i32_0 = arith.constant 0 : i32
    %c0_i32_1 = arith.constant 0 : i32
    return %c0_i32, %c0_i32_0 : i32, i32
  }
  func.func @transform_10(%arg0: i32) -> (i32, i32) {
    %c0_i32 = arith.constant 0 : i32
    %c0_i32_0 = arith.constant 0 : i32
    return %arg0, %c0_i32 : i32, i32
  }
}

</mosaic_0001>

<bundles_post_ra>
// kernel: tpu_custom_call.1
= control target key start
LH: loop header
LB: loop body
LE: loop exit
PB: predicated region body
PF: predicated region fallthrough
CT: control target
= control target key end

     0   :  { %vm66_vm0 = vcmask 261120   ;;  %v2183_v0 = vmov 0.0   ;;  %vm2184_vm1 = vmmov 0   ;;  %v122_v10 = vlaneseq  ;;  %s2872_s1 = inlined_call_operand.vmem [shape: bf16[64,32], index: 1, kind: input, shape index: {}]   ;;  %s2873_s4 = inlined_call_operand.vmem [shape: bf16[4,32], index: 4, kind: input, shape index: {}]   ;;  %s2874_s0 = inlined_call_operand.vmem [shape: f32[4,64], index: 0, kind: input, shape index: {}]   ;;  %s2875_s2 = inlined_call_operand.vmem [shape: bf16[64,64], index: 2, kind: input, shape index: {}]   ;;  %s2876_s3 = inlined_call_operand.vmem [shape: bf16[4,64,32], index: 3, kind: input, shape index: {}]   ;;  %s2877_s6 = inlined_call_operand.vmem [shape: bf16[32,64], index: 6, kind: input, shape index: {}]   ;;  %s2878_s5 = inlined_call_operand.vmem [shape: bf16[32,64], index: 5, kind: input, shape index: {}]   ;;  %s2879_s8 = inlined_call_operand.vmem [shape: bf16[64,32], index: 8, kind: input, shape index: {}]   ;;  %s2880_s7 = inlined_call_operand.vmem [shape: f32[1,64], index: 7, kind: input, shape index: {}]   ;;  %s2881_s9 = inlined_call_operand.vmem [shape: f32[1,32], index: 9, kind: input, shape index: {}]   ;;  %s2882_s10 = inlined_call_operand.vmem [shape: f32[64,32], index: 10, kind: output, shape index: {}]  }
   0x1   :  { %1880 = vmatprep.subr.bf16.mxu0 %v2183_v0  ;;  %v2007_v1 = vld [vmem:[%s2872_s1 + $0x18] sm:$0xff]   ;;  %1888 = vmatprep.mubr.msk.bf16.mxu0 %vm2184_vm1, %v2183_v0  ;;  %v2008_v3 = vld [vmem:[%s2872_s1 + $0x10] sm:$0xff]   ;;  %v2009_v5 = vld [vmem:[%s2872_s1 + $0x8] sm:$0xff]   ;;  %v2185_v24 = vmov 1966171168   ;;  %vm451_vm2 = vcmask 523264  }
   0x2   :  { %v80_v2 = vsel %vm66_vm0, %v2007_v1, 0  ;;  %v77_v4 = vsel %vm66_vm0, %v2008_v3, 0  ;;  %v74_v6 = vsel %vm66_vm0, %v2009_v5, 0  ;;  %v2010_v7 = vld [vmem:[%s2872_s1] sm:$0xff]   ;;  %v123_v11 = vshrl.u32 %v122_v10, 7  ;;  %v1820_v39 = vld [vmem:[%s2875_s2 + $0x8] sm:$0xff]  }
   0x3   :  { %1881 = vmatpush3.bf16.xpose.msra.mxu0 %v80_v2  ;;  %v71_v8 = vsel %vm66_vm0, %v2010_v7, 0  ;;  %v45_v9 = vld [vmem:[%s2873_s4] sm:$0x3]  ;;  %v272_v25 = vunpack.c.l.s4 %v2185_v24  ;;  %v2279_v47 = vunpack.c.l.bf16 %v1820_v39  ;;  %v1821_v55 = vld [vmem:[%s2875_s2 + $0x10] sm:$0xff]   ;;  %v2296_v62 = vunpack.c.h.bf16 %v1820_v39 }
   0x4   :  { %1882 = vmatprep.subr.bf16.mxu0 %v2183_v0  ;;  %v2261_v12 = vsub.s32 0, %v123_v11  ;;  %v159_v18 = vsub.s32 1, %v123_v11  ;;  %v194_v20 = vsub.s32 2, %v123_v11  ;;  %v229_v22 = vsub.s32 3, %v123_v11  ;;  %v1805_v33 = vld [vmem:[%s2875_s2] sm:$0xff]  }
   0x5   :  { %v273_v26 = vunpack.c.0.s8 %v272_v25  ;;  %v1725_v28 = vld.sshfl [vmem:[%s2874_s0] sm:$0x33 pattern:$0x75316420]  ;;  %v2274_v38 = vunpack.c.l.bf16 %v1805_v33  ;;  %v2284_v51 = vunpack.c.h.bf16 %v1805_v33  ;;  %v2301_v2 = vunpack.c.l.bf16 %v1821_v55 }
   0x6   :  { %v270_v40 = vcombine.high %v1725_v28, %v1725_v28  ;;  %v2310_v10 = vunpack.c.h.bf16 %v1821_v55 }
   0x7   :  { %v276_v27 = vsub.s32 %v273_v26, %v123_v11 }
   0x9   :  { %v2267_v29 = vrot.slane %v1725_v28, %v276_v27  ;;  %v2286_v52 = vrot.slane %v270_v40, %v276_v27 }
   0xb   :  { %1883 = vmatpush3.bf16.xpose.msra.mxu0 %v77_v4  ;;  %v290_v30 = vrot.slane %v2267_v29, %v2261_v12  ;;  %v2305_v3 = vrot.slane %v2286_v52, %v2261_v12 }
   0xc   :  { %1884 = vmatprep.subr.bf16.mxu0 %v2183_v0 }
  0x13   :  { %1885 = vmatpush3.bf16.xpose.msra.mxu0 %v74_v6  ;;  %v1822_v6 = vld [vmem:[%s2875_s2 + $0x18] sm:$0xff]  }
  0x14   :  { %1886 = vmatprep.subr.bf16.mxu0 %v2183_v0  ;;  %v2326_v25 = vunpack.c.h.bf16 %v1822_v6 }
  0x1b   :  { %1887 = vmatpush3.bf16.xpose.msra.mxu0 %v71_v8 }
  0x22   :  { %1889 = vmatmul.mubr.msk.bf16.vlgmr.msra.gmra.mxu0 %vm66_vm0, %v45_v9 }
  0xe2   :  { %v116_v13 = vpop.f32.mrf.mxu0 }
  0xe3   :  { %v125_v14 = vrot.slane %v116_v13, %v2261_v12  ;;  %v160_v19 = vrot.slane %v116_v13, %v159_v18  ;;  %v195_v21 = vrot.slane %v116_v13, %v194_v20  ;;  %v230_v23 = vrot.slane %v116_v13, %v229_v22 }
  0xe4   :  { %v1890_v15 = vpop.f32.mrf.mxu0 }
  0xe5   :  { %135 = vbcast.lane.b32.xlu1 %v125_v14, 272  ;;  %127 = vbcast.lane.b32.xlu0 %v125_v14, 256 }
  0xe6   :  { %v119_v16 = vpop.f32.mrf.mxu0 }
  0xe8   :  { %v1891_v17 = vpop.f32.mrf.mxu0 }
  0xe9   :  { %139 = vbcast.lane.b32.xlu1 %v125_v14, 280  ;;  %131 = vbcast.lane.b32.xlu0 %v125_v14, 264 }
  0xed   :  { %147 = vbcast.lane.b32.xlu1 %v125_v14, 296  ;;  %143 = vbcast.lane.b32.xlu0 %v125_v14, 288 }
  0xf1   :  { %155 = vbcast.lane.b32.xlu1 %v125_v14, 312  ;;  %151 = vbcast.lane.b32.xlu0 %v125_v14, 304 }
  0xf5   :  { %166 = vbcast.lane.b32.xlu1 %v160_v19, 264  ;;  %162 = vbcast.lane.b32.xlu0 %v160_v19, 256 }
  0xf9   :  { %174 = vbcast.lane.b32.xlu1 %v160_v19, 280  ;;  %170 = vbcast.lane.b32.xlu0 %v160_v19, 272 }
  0xfd   :  { %182 = vbcast.lane.b32.xlu1 %v160_v19, 296  ;;  %178 = vbcast.lane.b32.xlu0 %v160_v19, 288 }
 0x101   :  { %190 = vbcast.lane.b32.xlu1 %v160_v19, 312  ;;  %186 = vbcast.lane.b32.xlu0 %v160_v19, 304  ;;  %v2322_v19 = vunpack.c.l.bf16 %v1822_v6 }
 0x105   :  { %201 = vbcast.lane.b32.xlu1 %v195_v21, 264  ;;  %197 = vbcast.lane.b32.xlu0 %v195_v21, 256 }
 0x109   :  { %209 = vbcast.lane.b32.xlu1 %v195_v21, 280  ;;  %205 = vbcast.lane.b32.xlu0 %v195_v21, 272 }
 0x10d   :  { %236 = vbcast.lane.b32.xlu1 %v230_v23, 264  ;;  %232 = vbcast.lane.b32.xlu0 %v230_v23, 256 }
 0x111   :  { %244 = vbcast.lane.b32.xlu1 %v230_v23, 280  ;;  %240 = vbcast.lane.b32.xlu0 %v230_v23, 272 }
 0x115   :  { %217 = vbcast.lane.b32.xlu1 %v195_v21, 296  ;;  %213 = vbcast.lane.b32.xlu0 %v195_v21, 288 }
 0x119   :  { %225 = vbcast.lane.b32.xlu1 %v195_v21, 312  ;;  %221 = vbcast.lane.b32.xlu0 %v195_v21, 304 }
 0x11d   :  { %252 = vbcast.lane.b32.xlu1 %v230_v23, 296  ;;  %248 = vbcast.lane.b32.xlu0 %v230_v23, 288 }
 0x121   :  { %260 = vbcast.lane.b32.xlu1 %v230_v23, 312  ;;  %256 = vbcast.lane.b32.xlu0 %v230_v23, 304 }
 0x157   :  { %v136_v31 = vpop.permute.xlu1 %135  ;;  %v128_v32 = vpop.permute.xlu0 %127 }
 0x158   :  { %v309_v34 = vadd.f32 %v290_v30, %v136_v31  ;;  %v307_v35 = vadd.f32 %v290_v30, %v128_v32 }
 0x15a   :  { %v341_v36 = vmul.f32 0.2, %v309_v34  ;;  %v339_v37 = vmul.f32 0.2, %v307_v35 }
 0x15b   :  { %v140_v41 = vpop.permute.xlu1 %139  ;;  %v132_v42 = vpop.permute.xlu0 %131 }
 0x15c   :  { %v371_v43 = vmax.f32 %v307_v35, %v339_v37  ;;  %v310_v44 = vadd.f32 %v290_v30, %v140_v41  ;;  %v308_v45 = vadd.f32 %v290_v30, %v132_v42  ;;  %v373_v46 = vmax.f32 %v309_v34, %v341_v36 }
 0x15e   :  { %v342_v48 = vmul.f32 0.2, %v310_v44  ;;  %v340_v49 = vmul.f32 0.2, %v308_v45  ;;  %v2282_v50 = vadd.f32 %v2274_v38, %v371_v43  ;;  %v2294_v61 = vadd.f32 %v2279_v47, %v373_v46 }
 0x15f   :  { %v148_v53 = vpop.permute.xlu1 %147  ;;  %v144_v54 = vpop.permute.xlu0 %143 }
 0x160   :  { %v372_v56 = vmax.f32 %v308_v45, %v340_v49  ;;  %v312_v57 = vadd.f32 %v290_v30, %v148_v53  ;;  %v311_v58 = vadd.f32 %v290_v30, %v144_v54  ;;  %v374_v59 = vmax.f32 %v310_v44, %v342_v48 }
 0x161   :  { %v452_v60 = vsel %vm451_vm2, %v2282_v50, -inf  ;;  %v458_v14 = vsel %vm451_vm2, %v2294_v61, -inf  ;;  %v285_v53 = vcombine.high %v2267_v29, %v2267_v29 }
 0x162   :  { %v344_v63 = vmul.f32 0.2, %v312_v57  ;;  %v343_v0 = vmul.f32 0.2, %v311_v58  ;;  %453 = vmax.xlane.f32.xlu0 %v452_v60  ;;  %v2299_v1 = vadd.f32 %v2284_v51, %v372_v56  ;;  %v2317_v15 = vadd.f32 %v2296_v62, %v374_v59 }
 0x163   :  { %v156_v4 = vpop.permute.xlu1 %155  ;;  %v152_v5 = vpop.permute.xlu0 %151  ;;  %v2365_v6 = vrot.slane %v285_v53, %v2261_v12 }
 0x164   :  { %v375_v7 = vmax.f32 %v311_v58, %v343_v0  ;;  %v314_v8 = vadd.f32 %v290_v30, %v156_v4  ;;  %v313_v9 = vadd.f32 %v290_v30, %v152_v5  ;;  %v376_v11 = vmax.f32 %v312_v57, %v344_v63 }
 0x165   :  { %v455_v13 = vsel %vm451_vm2, %v2299_v1, -inf  ;;  %v461_v28 = vsel %vm451_vm2, %v2317_v15, -inf }
 0x166   :  { %v346_v16 = vmul.f32 0.2, %v314_v8  ;;  %v345_v17 = vmul.f32 0.2, %v313_v9  ;;  %456 = vmax.xlane.f32.xlu1 %v455_v13  ;;  %459 = vmax.xlane.f32.xlu0 %v458_v14  ;;  %v2320_v18 = vadd.f32 %v2301_v2, %v375_v7  ;;  %v2333_v30 = vadd.f32 %v2310_v10, %v376_v11 }
 0x167   :  { %v167_v20 = vpop.permute.xlu1 %166  ;;  %v163_v21 = vpop.permute.xlu0 %162 }
 0x168   :  { %v377_v22 = vmax.f32 %v313_v9, %v345_v17  ;;  %v316_v23 = vadd.f32 %v2305_v3, %v167_v20  ;;  %v315_v24 = vadd.f32 %v2305_v3, %v163_v21  ;;  %v378_v26 = vmax.f32 %v314_v8, %v346_v16 }
 0x169   :  { %v464_v27 = vsel %vm451_vm2, %v2320_v18, -inf  ;;  %v467_v42 = vsel %vm451_vm2, %v2333_v30, -inf }
 0x16a   :  { %v348_v31 = vmul.f32 0.2, %v316_v23  ;;  %v347_v32 = vmul.f32 0.2, %v315_v24  ;;  %465 = vmax.xlane.f32.xlu1 %v464_v27  ;;  %462 = vmax.xlane.f32.xlu0 %v461_v28  ;;  %v2336_v33 = vadd.f32 %v2322_v19, %v377_v22  ;;  %v2345_v43 = vadd.f32 %v2326_v25, %v378_v26 }
 0x16b   :  { %v175_v34 = vpop.permute.xlu1 %174  ;;  %v171_v35 = vpop.permute.xlu0 %170 }
 0x16c   :  { %v379_v36 = vmax.f32 %v315_v24, %v347_v32  ;;  %v318_v37 = vadd.f32 %v2305_v3, %v175_v34  ;;  %v317_v39 = vadd.f32 %v2305_v3, %v171_v35  ;;  %v380_v40 = vmax.f32 %v316_v23, %v348_v31 }
 0x16d   :  { %v470_v41 = vsel %vm451_vm2, %v2336_v33, -inf  ;;  %v473_v58 = vsel %vm451_vm2, %v2345_v43, -inf  ;;  %v286_v24 = vcombine.high %v2286_v52, %v2286_v52 }
 0x16e   :  { %v350_v44 = vmul.f32 0.2, %v318_v37  ;;  %v349_v45 = vmul.f32 0.2, %v317_v39  ;;  %471 = vmax.xlane.f32.xlu1 %v470_v41  ;;  %468 = vmax.xlane.f32.xlu0 %v467_v42  ;;  %v2348_v46 = vadd.f32 %v2274_v38, %v379_v36  ;;  %v2359_v60 = vadd.f32 %v2284_v51, %v380_v40  ;;  %v2012_v41 = vld [vmem:[%s2876_s3 + $0x10] sm:$0xff]  }
 0x16f   :  { %v183_v48 = vpop.permute.xlu1 %182  ;;  %v179_v49 = vpop.permute.xlu0 %178  ;;  %v2400_v42 = vrot.slane %v286_v24, %v2261_v12 }
 0x170   :  { %v381_v54 = vmax.f32 %v317_v39, %v349_v45  ;;  %v320_v55 = vadd.f32 %v2305_v3, %v183_v48  ;;  %v319_v56 = vadd.f32 %v2305_v3, %v179_v49  ;;  %v382_v57 = vmax.f32 %v318_v37, %v350_v44 }
 0x171   :  { %v476_v59 = vsel %vm451_vm2, %v2348_v46, -inf  ;;  %v479_v13 = vsel %vm451_vm2, %v2359_v60, -inf }
 0x172   :  { %v352_v63 = vmul.f32 0.2, %v320_v55  ;;  %v351_v0 = vmul.f32 0.2, %v319_v56  ;;  %474 = vmax.xlane.f32.xlu0 %v473_v58  ;;  %477 = vmax.xlane.f32.xlu1 %v476_v59  ;;  %v2362_v29 = vadd.f32 %v2279_v47, %v381_v54  ;;  %v2374_v16 = vadd.f32 %v2296_v62, %v382_v57 }
 0x173   :  { %v191_v4 = vpop.permute.xlu1 %190  ;;  %v187_v5 = vpop.permute.xlu0 %186 }
 0x174   :  { %v383_v7 = vmax.f32 %v319_v56, %v351_v0  ;;  %v322_v8 = vadd.f32 %v2305_v3, %v191_v4  ;;  %v321_v9 = vadd.f32 %v2305_v3, %v187_v5  ;;  %v384_v11 = vmax.f32 %v320_v55, %v352_v63  ;;  %v2011_v3 = vld [vmem:[%s2876_s3 + $0x18] sm:$0xff]   ;;  %v2013_v63 = vld [vmem:[%s2876_s3 + $0x8] sm:$0xff]  }
 0x175   :  { %v482_v14 = vsel %vm451_vm2, %v2362_v29, -inf  ;;  %v485_v32 = vsel %vm451_vm2, %v2374_v16, -inf  ;;  %1892 = vmatprep.subr.bf16.mxu1 %v2011_v3 }
 0x176   :  { %v354_v17 = vmul.f32 0.2, %v322_v8  ;;  %v353_v20 = vmul.f32 0.2, %v321_v9  ;;  %480 = vmax.xlane.f32.xlu0 %v479_v13  ;;  %483 = vmax.xlane.f32.xlu1 %v482_v14  ;;  %v2377_v21 = vadd.f32 %v2301_v2, %v383_v7  ;;  %v2391_v35 = vadd.f32 %v2310_v10, %v384_v11 }
 0x177   :  { %v202_v22 = vpop.permute.xlu1 %201  ;;  %v198_v23 = vpop.permute.xlu0 %197  ;;  %1893 = vmatpush3.bf16.msra.mxu1 %v2011_v3 }
 0x178   :  { %v385_v26 = vmax.f32 %v321_v9, %v353_v20  ;;  %v324_v27 = vadd.f32 %v2365_v6, %v202_v22  ;;  %v323_v28 = vadd.f32 %v2365_v6, %v198_v23  ;;  %v386_v31 = vmax.f32 %v322_v8, %v354_v17  ;;  %1894 = vmatprep.subr.bf16.mxu1 %v2012_v41  ;;  %v2014_v23 = vld [vmem:[%s2876_s3] sm:$0xff]  }
 0x179   :  { %v488_v34 = vsel %vm451_vm2, %v2377_v21, -inf  ;;  %v491_v53 = vsel %vm451_vm2, %v2391_v35, -inf }
 0x17a   :  { %v356_v36 = vmul.f32 0.2, %v324_v27  ;;  %v355_v37 = vmul.f32 0.2, %v323_v28  ;;  %486 = vmax.xlane.f32.xlu0 %v485_v32  ;;  %489 = vmax.xlane.f32.xlu1 %v488_v34  ;;  %v2394_v52 = vadd.f32 %v2322_v19, %v385_v26  ;;  %v2409_v55 = vadd.f32 %v2326_v25, %v386_v31 }
 0x17b   :  { %v210_v39 = vpop.permute.xlu1 %209  ;;  %v206_v40 = vpop.permute.xlu0 %205  ;;  %1895 = vmatpush3.bf16.msra.mxu1 %v2012_v41  ;;  %v2447_v41 = vld [vmem:[%s2876_s3 + $0x38] sm:$0xff]  }
 0x17c   :  { %v387_v44 = vmax.f32 %v323_v28, %v355_v37  ;;  %v326_v45 = vadd.f32 %v2365_v6, %v210_v39  ;;  %v325_v48 = vadd.f32 %v2365_v6, %v206_v40  ;;  %v388_v49 = vmax.f32 %v324_v27, %v356_v36  ;;  %1896 = vmatprep.subr.bf16.mxu1 %v2013_v63 }
 0x17d   :  { %v494_v54 = vsel %vm451_vm2, %v2394_v52, -inf  ;;  %v497_v8 = vsel %vm451_vm2, %v2409_v55, -inf }
 0x17e   :  { %v358_v56 = vmul.f32 0.2, %v326_v45  ;;  %v357_v57 = vmul.f32 0.2, %v325_v48  ;;  %492 = vmax.xlane.f32.xlu0 %v491_v53  ;;  %495 = vmax.xlane.f32.xlu1 %v494_v54  ;;  %v2412_v12 = vadd.f32 %v2274_v38, %v387_v44  ;;  %v2424_v11 = vadd.f32 %v2284_v51, %v388_v49 }
 0x17f   :  { %v237_v58 = vpop.permute.xlu1 %236  ;;  %v233_v59 = vpop.permute.xlu0 %232  ;;  %1897 = vmatpush3.bf16.msra.mxu1 %v2013_v63 }
 0x180   :  { %v389_v0 = vmax.f32 %v325_v48, %v357_v57  ;;  %v332_v4 = vadd.f32 %v2400_v42, %v237_v58  ;;  %v331_v5 = vadd.f32 %v2400_v42, %v233_v59  ;;  %v390_v7 = vmax.f32 %v326_v45, %v358_v56  ;;  %1898 = vmatprep.subr.bf16.mxu1 %v2014_v23 }
 0x181   :  { %v500_v9 = vsel %vm451_vm2, %v2412_v12, -inf  ;;  %v503_v28 = vsel %vm451_vm2, %v2424_v11, -inf }
 0x182   :  { %v364_v13 = vmul.f32 0.2, %v332_v4  ;;  %v363_v14 = vmul.f32 0.2, %v331_v5  ;;  %498 = vmax.xlane.f32.xlu0 %v497_v8  ;;  %501 = vmax.xlane.f32.xlu1 %v500_v9  ;;  %v2427_v17 = vadd.f32 %v2279_v47, %v389_v0  ;;  %v2439_v32 = vadd.f32 %v2296_v62, %v390_v7 }
 0x183   :  { %v245_v20 = vpop.permute.xlu1 %244  ;;  %v241_v22 = vpop.permute.xlu0 %240  ;;  %1899 = vmatpush3.bf16.msra.mxu1 %v2014_v23 }
 0x184   :  { %v395_v3 = vmax.f32 %v331_v5, %v363_v14  ;;  %v334_v24 = vadd.f32 %v2400_v42, %v245_v20  ;;  %v333_v26 = vadd.f32 %v2400_v42, %v241_v22  ;;  %v396_v27 = vmax.f32 %v332_v4, %v364_v13  ;;  %1908 = vmatprep.subr.bf16.mxu1 %v2447_v41 }
 0x185   :  { %v506_v31 = vsel %vm451_vm2, %v2427_v17, -inf  ;;  %v509_v53 = vsel %vm451_vm2, %v2439_v32, -inf }
 0x186   :  { %v366_v34 = vmul.f32 0.2, %v334_v24  ;;  %v365_v36 = vmul.f32 0.2, %v333_v26  ;;  %504 = vmax.xlane.f32.xlu0 %v503_v28  ;;  %507 = vmax.xlane.f32.xlu1 %v506_v31  ;;  %v2442_v37 = vadd.f32 %v2274_v38, %v395_v3  ;;  %v2456_v54 = vadd.f32 %v2284_v51, %v396_v27 }
 0x187   :  { %v218_v39 = vpop.permute.xlu1 %217  ;;  %v214_v40 = vpop.permute.xlu0 %213 }
 0x188   :  { %v397_v44 = vmax.f32 %v333_v26, %v365_v36  ;;  %v328_v45 = vadd.f32 %v2365_v6, %v218_v39  ;;  %v327_v48 = vadd.f32 %v2365_v6, %v214_v40  ;;  %v398_v49 = vmax.f32 %v334_v24, %v366_v34 }
 0x189   :  { %v524_v38 = vsel %vm451_vm2, %v2442_v37, -inf  ;;  %v527_v51 = vsel %vm451_vm2, %v2456_v54, -inf }
 0x18a   :  { %v360_v56 = vmul.f32 0.2, %v328_v45  ;;  %v359_v57 = vmul.f32 0.2, %v327_v48  ;;  %510 = vmax.xlane.f32.xlu0 %v509_v53  ;;  %525 = vmax.xlane.f32.xlu1 %v524_v38  ;;  %v2460_v58 = vadd.f32 %v2279_v47, %v397_v44  ;;  %v2469_v9 = vadd.f32 %v2296_v62, %v398_v49 }
 0x18b   :  { %v226_v59 = vpop.permute.xlu1 %225  ;;  %v222_v63 = vpop.permute.xlu0 %221 }
 0x18c   :  { %v391_v0 = vmax.f32 %v327_v48, %v359_v57  ;;  %v330_v4 = vadd.f32 %v2365_v6, %v226_v59  ;;  %v329_v5 = vadd.f32 %v2365_v6, %v222_v63  ;;  %v392_v7 = vmax.f32 %v328_v45, %v360_v56 }
 0x18d   :  { %v530_v8 = vsel %vm451_vm2, %v2460_v58, -inf  ;;  %v533_v26 = vsel %vm451_vm2, %v2469_v9, -inf }
 0x18e   :  { %v362_v13 = vmul.f32 0.2, %v330_v4  ;;  %v361_v47 = vmul.f32 0.2, %v329_v5  ;;  %528 = vmax.xlane.f32.xlu0 %v527_v51  ;;  %531 = vmax.xlane.f32.xlu1 %v530_v8  ;;  %v2472_v14 = vadd.f32 %v2301_v2, %v391_v0  ;;  %v2481_v27 = vadd.f32 %v2310_v10, %v392_v7  ;;  %v2020_v51 = vld [vmem:[%s2876_s3 + $0x50] sm:$0xff]  }
 0x18f   :  { %v253_v20 = vpop.permute.xlu1 %252  ;;  %v249_v22 = vpop.permute.xlu0 %248 }
 0x190   :  { %v393_v6 = vmax.f32 %v329_v5, %v361_v47  ;;  %v336_v23 = vadd.f32 %v2400_v42, %v253_v20  ;;  %v335_v3 = vadd.f32 %v2400_v42, %v249_v22  ;;  %v394_v24 = vmax.f32 %v330_v4, %v362_v13  ;;  %v2023_v20 = vld [vmem:[%s2876_s3 + $0x40] sm:$0xff]  }
 0x191   :  { %v512_v62 = vsel %vm451_vm2, %v2472_v14, -inf  ;;  %v515_v49 = vsel %vm451_vm2, %v2481_v27, -inf }
 0x192   :  { %v368_v28 = vmul.f32 0.2, %v336_v23  ;;  %v367_v31 = vmul.f32 0.2, %v335_v3  ;;  %534 = vmax.xlane.f32.xlu0 %v533_v26  ;;  %513 = vmax.xlane.f32.xlu1 %v512_v62  ;;  %v2484_v34 = vadd.f32 %v2322_v19, %v393_v6  ;;  %v2493_v38 = vadd.f32 %v2326_v25, %v394_v24 }
 0x193   :  { %v261_v36 = vpop.permute.xlu1 %260  ;;  %v257_v39 = vpop.permute.xlu0 %256 }
 0x194   :  { %v399_v40 = vmax.f32 %v335_v3, %v367_v31  ;;  %v338_v44 = vadd.f32 %v2400_v42, %v261_v36  ;;  %v337_v45 = vadd.f32 %v2400_v42, %v257_v39  ;;  %v400_v48 = vmax.f32 %v336_v23, %v368_v28  ;;  %v2019_v42 = vld [vmem:[%s2876_s3 + $0x58] sm:$0xff]  }
 0x195   :  { %v518_v53 = vsel %vm451_vm2, %v2484_v34, -inf  ;;  %v521_v5 = vsel %vm451_vm2, %v2493_v38, -inf  ;;  %1924 = vmatprep.subr.bf16.mxu0 %v2019_v42 }
 0x196   :  { %v370_v56 = vmul.f32 0.2, %v338_v44  ;;  %v369_v57 = vmul.f32 0.2, %v337_v45  ;;  %516 = vmax.xlane.f32.xlu0 %v515_v49  ;;  %519 = vmax.xlane.f32.xlu1 %v518_v53  ;;  %v2496_v59 = vadd.f32 %v2301_v2, %v399_v40  ;;  %v2506_v7 = vadd.f32 %v2310_v10, %v400_v48 }
 0x197   :  { %1925 = vmatpush3.bf16.msra.mxu0 %v2019_v42 }
 0x198   :  { %v401_v63 = vmax.f32 %v337_v45, %v369_v57  ;;  %v536_v0 = vsel %vm451_vm2, %v2496_v59, -inf  ;;  %v402_v4 = vmax.f32 %v338_v44, %v370_v56  ;;  %v539_v13 = vsel %vm451_vm2, %v2506_v7, -inf  ;;  %1926 = vmatprep.subr.bf16.mxu0 %v2020_v51 }
 0x19a   :  { %522 = vmax.xlane.f32.xlu0 %v521_v5  ;;  %537 = vmax.xlane.f32.xlu1 %v536_v0  ;;  %v2509_v2 = vadd.f32 %v2322_v19, %v401_v63  ;;  %v2519_v10 = vadd.f32 %v2326_v25, %v402_v4  ;;  %v2021_v19 = vld [vmem:[%s2876_s3 + $0x48] sm:$0xff]  }
 0x19b   :  { %1927 = vmatpush3.bf16.msra.mxu0 %v2020_v51 }
 0x19c   :  { %v542_v8 = vsel %vm451_vm2, %v2509_v2, -inf  ;;  %v545_v47 = vsel %vm451_vm2, %v2519_v10, -inf  ;;  %1928 = vmatprep.subr.bf16.mxu0 %v2021_v19 }
 0x19e   :  { %540 = vmax.xlane.f32.xlu0 %v539_v13  ;;  %543 = vmax.xlane.f32.xlu1 %v542_v8 }
 0x19f   :  { %1929 = vmatpush3.bf16.msra.mxu0 %v2021_v19 }
 0x1a0   :  { %1930 = vmatprep.subr.bf16.mxu0 %v2023_v20 }
 0x1a2   :  { %546 = vmax.xlane.f32.xlu0 %v545_v47 }
 0x1a3   :  { %1931 = vmatpush3.bf16.msra.mxu0 %v2023_v20 }
 0x1eb   :  { %v454_v25 = vpop.xlane.xlu0 %453 }
 0x1ec   :  { %v548_v22 = vsub.f32 %v2282_v50, %v454_v25 }
 0x1ee   :  { %v580_v6 = vmul.f32 1.442695, %v548_v22 }
 0x1ef   :  { %v457_v23 = vpop.xlane.xlu1 %456  ;;  %v460_v3 = vpop.xlane.xlu0 %459 }
 0x1f0   :  { %2035 = vpow2.f32 %v580_v6  ;;  %v549_v24 = vsub.f32 %v2299_v1, %v457_v23  ;;  %v550_v26 = vsub.f32 %v2294_v61, %v460_v3 }
 0x1f2   :  { %v582_v62 = vmul.f32 1.442695, %v549_v24  ;;  %v584_v36 = vmul.f32 1.442695, %v550_v26 }
 0x1f3   :  { %v466_v28 = vpop.xlane.xlu1 %465  ;;  %v463_v31 = vpop.xlane.xlu0 %462 }
 0x1f4   :  { %2037 = vpow2.f32 %v582_v62  ;;  %v552_v39 = vsub.f32 %v2320_v18, %v466_v28  ;;  %v551_v40 = vsub.f32 %v2317_v15, %v463_v31  ;;  %v2016_v62 = vld [vmem:[%s2876_s3 + $0x30] sm:$0xff]  }
 0x1f5   :  { %2039 = vpow2.f32 %v584_v36 }
 0x1f6   :  { %v586_v44 = vmul.f32 1.442695, %v551_v40  ;;  %v588_v48 = vmul.f32 1.442695, %v552_v39 }
 0x1f7   :  { %v472_v45 = vpop.xlane.xlu1 %471  ;;  %v469_v50 = vpop.xlane.xlu0 %468 }
 0x1f8   :  { %v554_v49 = vsub.f32 %v2336_v33, %v472_v45  ;;  %v553_v1 = vsub.f32 %v2333_v30, %v469_v50  ;;  %2041 = vpow2.f32 %v586_v44 }
 0x1f9   :  { %2043 = vpow2.f32 %v588_v48 }
 0x1fa   :  { %v590_v61 = vmul.f32 1.442695, %v553_v1  ;;  %v592_v53 = vmul.f32 1.442695, %v554_v49 }
 0x1fb   :  { %v475_v56 = vpop.xlane.xlu0 %474  ;;  %v478_v57 = vpop.xlane.xlu1 %477 }
 0x1fc   :  { %v555_v42 = vsub.f32 %v2345_v43, %v475_v56  ;;  %v556_v18 = vsub.f32 %v2348_v46, %v478_v57  ;;  %2045 = vpow2.f32 %v590_v61 }
 0x1fd   :  { %v2036_v15 = vpop.eup %2035  ;;  %2047 = vpow2.f32 %v592_v53 }
 0x1fe   :  { %v594_v63 = vmul.f32 1.442695, %v555_v42  ;;  %v596_v0 = vmul.f32 1.442695, %v556_v18  ;;  %v644_v4 = vsel %vm451_vm2, %v2036_v15, 0.0 }
 0x1ff   :  { %v481_v33 = vpop.xlane.xlu0 %480  ;;  %v484_v5 = vpop.xlane.xlu1 %483  ;;  %645 = vadd.xlane.f32.xlu1 %v644_v4 }
 0x200   :  { %2049 = vpow2.f32 %v594_v63  ;;  %v557_v30 = vsub.f32 %v2359_v60, %v481_v33  ;;  %v558_v51 = vsub.f32 %v2362_v29, %v484_v5 }
 0x201   :  { %v2038_v8 = vpop.eup %2037  ;;  %2051 = vpow2.f32 %v596_v0 }
 0x202   :  { %v598_v43 = vmul.f32 1.442695, %v557_v30  ;;  %v647_v46 = vsel %vm451_vm2, %v2038_v8, 0.0  ;;  %v804_v13 = vpack.c.bf16 %v2038_v8, %v2036_v15  ;;  %v600_v19 = vmul.f32 1.442695, %v558_v51  ;;  %v2040_v60 = vpop.eup %2039 }
 0x203   :  { %v487_v47 = vpop.xlane.xlu0 %486  ;;  %v490_v20 = vpop.xlane.xlu1 %489  ;;  %648 = vadd.xlane.f32.xlu0 %v647_v46  ;;  %v650_v30 = vsel %vm451_vm2, %v2040_v60, 0.0 }
 0x204   :  { %2053 = vpow2.f32 %v598_v43  ;;  %v559_v25 = vsub.f32 %v2374_v16, %v487_v47  ;;  %v560_v22 = vsub.f32 %v2377_v21, %v490_v20  ;;  %1900 = vmatprep.mubr.msk.bf16.mxu1 %vm451_vm2, %v804_v13 }
 0x205   :  { %v2545_v6 = vpop.eup %2041  ;;  %2055 = vpow2.f32 %v600_v19 }
 0x206   :  { %v602_v29 = vmul.f32 1.442695, %v559_v25  ;;  %v604_v23 = vmul.f32 1.442695, %v560_v22  ;;  %v805_v26 = vpack.c.bf16 %v2545_v6, %v2040_v60  ;;  %v2553_v28 = vpop.eup %2043  ;;  %v653_v20 = vsel %vm451_vm2, %v2545_v6, 0.0 }
 0x207   :  { %v493_v3 = vpop.xlane.xlu0 %492  ;;  %v496_v24 = vpop.xlane.xlu1 %495 }
 0x208   :  { %2057 = vpow2.f32 %v602_v29  ;;  %v561_v16 = vsub.f32 %v2391_v35, %v493_v3  ;;  %v562_v21 = vsub.f32 %v2394_v52, %v496_v24  ;;  %1901 = vmatmul.mubr.msk.bf16.vlgmr.msra.gmra.mxu1 %vm451_vm2, %v805_v26  ;;  %v2017_v35 = vld [vmem:[%s2876_s3 + $0x28] sm:$0xff]  }
 0x209   :  { %v2556_v31 = vpop.eup %2045  ;;  %1909 = vmatpush3.bf16.msra.mxu1 %v2447_v41  ;;  %2059 = vpow2.f32 %v604_v23 }
 0x20a   :  { %v606_v36 = vmul.f32 1.442695, %v561_v16  ;;  %v608_v39 = vmul.f32 1.442695, %v562_v21  ;;  %v806_v45 = vpack.c.bf16 %v2556_v31, %v2553_v28  ;;  %1910 = vmatprep.subr.bf16.mxu1 %v2016_v62  ;;  %v2564_v52 = vpop.eup %2047 }
 0x20b   :  { %v499_v40 = vpop.xlane.xlu0 %498  ;;  %v502_v44 = vpop.xlane.xlu1 %501 }
 0x20c   :  { %2061 = vpow2.f32 %v606_v36  ;;  %v563_v50 = vsub.f32 %v2409_v55, %v499_v40  ;;  %v564_v48 = vsub.f32 %v2412_v12, %v502_v44  ;;  %1904 = vmatprep.mubr.msk.bf16.mxu1 %vm451_vm2, %v806_v45  ;;  %v2018_v55 = vld [vmem:[%s2876_s3 + $0x20] sm:$0xff]  }
 0x20d   :  { %v2568_v41 = vpop.eup %2049  ;;  %1911 = vmatpush3.bf16.msra.mxu1 %v2016_v62  ;;  %2063 = vpow2.f32 %v608_v39 }
 0x20e   :  { %v2052_v49 = vpop.eup %2051  ;;  %v610_v1 = vmul.f32 1.442695, %v563_v50  ;;  %v612_v61 = vmul.f32 1.442695, %v564_v48  ;;  %v807_v53 = vpack.c.bf16 %v2568_v41, %v2564_v52  ;;  %1912 = vmatprep.subr.bf16.mxu1 %v2017_v35 }
 0x20f   :  { %v505_v56 = vpop.xlane.xlu0 %504  ;;  %v508_v57 = vpop.xlane.xlu1 %507  ;;  %v668_v42 = vsel %vm451_vm2, %v2052_v49, 0.0 }
 0x210   :  { %2065 = vpow2.f32 %v610_v1  ;;  %v565_v12 = vsub.f32 %v2424_v11, %v505_v56  ;;  %v566_v18 = vsub.f32 %v2427_v17, %v508_v57  ;;  %669 = vadd.xlane.f32.xlu1 %v668_v42  ;;  %1905 = vmatmul.mubr.msk.bf16.gmra.mxu1 %vm451_vm2, %v807_v53  ;;  %v2022_v11 = vld [vmem:[%s2876_s3 + $0x78] sm:$0xff]  }
 0x211   :  { %v2054_v15 = vpop.eup %2053  ;;  %2067 = vpow2.f32 %v612_v61  ;;  %1913 = vmatpush3.bf16.msra.mxu1 %v2017_v35 }
 0x212   :  { %v614_v63 = vmul.f32 1.442695, %v565_v12  ;;  %v616_v0 = vmul.f32 1.442695, %v566_v18  ;;  %v671_v4 = vsel %vm451_vm2, %v2054_v15, 0.0  ;;  %v808_v33 = vpack.c.bf16 %v2054_v15, %v2052_v49  ;;  %1914 = vmatprep.subr.bf16.mxu1 %v2018_v55  ;;  %v2056_v17 = vpop.eup %2055 }
 0x213   :  { %v511_v5 = vpop.xlane.xlu0 %510  ;;  %672 = vadd.xlane.f32.xlu0 %v671_v4  ;;  %v526_v51 = vpop.xlane.xlu1 %525  ;;  %v674_v22 = vsel %vm451_vm2, %v2056_v17, 0.0 }
 0x214   :  { %2069 = vpow2.f32 %v614_v63  ;;  %v567_v8 = vsub.f32 %v2439_v32, %v511_v5  ;;  %651 = vadd.xlane.f32.xlu1 %v650_v30  ;;  %v572_v43 = vsub.f32 %v2442_v37, %v526_v51  ;;  %1916 = vmatprep.mubr.msk.bf16.mxu1 %vm451_vm2, %v808_v33  ;;  %v2024_v32 = vld [vmem:[%s2876_s3 + $0x70] sm:$0xff]  }
 0x215   :  { %v2058_v46 = vpop.eup %2057  ;;  %2071 = vpow2.f32 %v616_v0  ;;  %1915 = vmatpush3.bf16.msra.mxu1 %v2018_v55 }
 0x216   :  { %v809_v13 = vpack.c.bf16 %v2058_v46, %v2056_v17  ;;  %v618_v19 = vmul.f32 1.442695, %v567_v8  ;;  %v628_v47 = vmul.f32 1.442695, %v572_v43  ;;  %1940 = vmatprep.subr.bf16.mxu1 %v2022_v11  ;;  %v2594_v37 = vpop.eup %2059  ;;  %v677_v26 = vsel %vm451_vm2, %v2058_v46, 0.0 }
 0x217   :  { %654 = vadd.xlane.f32.xlu0 %v653_v20  ;;  %v529_v25 = vpop.xlane.xlu0 %528  ;;  %v532_v60 = vpop.xlane.xlu1 %531 }
 0x218   :  { %2073 = vpow2.f32 %v618_v19  ;;  %v573_v29 = vsub.f32 %v2456_v54, %v529_v25  ;;  %675 = vadd.xlane.f32.xlu1 %v674_v22  ;;  %v574_v23 = vsub.f32 %v2460_v58, %v532_v60  ;;  %1917 = vmatmul.mubr.msk.bf16.vlgmr.msra.gmra.mxu1 %vm451_vm2, %v809_v13  ;;  %v2025_v54 = vld [vmem:[%s2876_s3 + $0x68] sm:$0xff]  }
 0x219   :  { %v2598_v3 = vpop.eup %2061  ;;  %2075 = vpow2.f32 %v628_v47  ;;  %1941 = vmatpush3.bf16.msra.mxu1 %v2022_v11 }
 0x21a   :  { %v630_v6 = vmul.f32 1.442695, %v573_v29  ;;  %v632_v24 = vmul.f32 1.442695, %v574_v23  ;;  %v810_v62 = vpack.c.bf16 %v2598_v3, %v2594_v37  ;;  %1942 = vmatprep.subr.bf16.mxu1 %v2024_v32  ;;  %v2607_v58 = vpop.eup %2063  ;;  %v656_v23 = vsel %vm451_vm2, %v2553_v28, 0.0 }
 0x21b   :  { %678 = vadd.xlane.f32.xlu0 %v677_v26  ;;  %v535_v16 = vpop.xlane.xlu0 %534  ;;  %v514_v21 = vpop.xlane.xlu1 %513  ;;  %v683_v28 = vsel %vm451_vm2, %v2598_v3, 0.0 }
 0x21c   :  { %2077 = vpow2.f32 %v630_v6  ;;  %v575_v36 = vsub.f32 %v2469_v9, %v535_v16  ;;  %v568_v39 = vsub.f32 %v2472_v14, %v514_v21  ;;  %1920 = vmatprep.mubr.msk.bf16.mxu1 %vm451_vm2, %v810_v62  ;;  %v2026_v9 = vld [vmem:[%s2876_s3 + $0x60] sm:$0xff]   ;;  %v680_v62 = vsel %vm451_vm2, %v2594_v37, 0.0 }
 0x21d   :  { %v2612_v40 = vpop.eup %2065  ;;  %2079 = vpow2.f32 %v632_v24  ;;  %1943 = vmatpush3.bf16.msra.mxu1 %v2024_v32  ;;  %v665_v37 = vsel %vm451_vm2, %v2568_v41, 0.0  ;;  %v2179_v41 = vld [vmem:[%s2872_s1] sm:$0xff]  }
 0x21e   :  { %v2068_v44 = vpop.eup %2067  ;;  %v634_v45 = vmul.f32 1.442695, %v575_v36  ;;  %v811_v35 = vpack.c.bf16 %v2612_v40, %v2607_v58  ;;  %v620_v50 = vmul.f32 1.442695, %v568_v39  ;;  %1944 = vmatprep.subr.bf16.mxu1 %v2025_v54  ;;  %v662_v36 = vsel %vm451_vm2, %v2564_v52, 0.0 }
 0x21f   :  { %v517_v48 = vpop.xlane.xlu0 %516  ;;  %v692_v49 = vsel %vm451_vm2, %v2068_v44, 0.0  ;;  %v520_v1 = vpop.xlane.xlu1 %519  ;;  %v689_v52 = vsel %vm451_vm2, %v2612_v40, 0.0 }
 0x220   :  { %2081 = vpow2.f32 %v634_v45  ;;  %v569_v14 = vsub.f32 %v2481_v27, %v517_v48  ;;  %693 = vadd.xlane.f32.xlu1 %v692_v49  ;;  %v570_v61 = vsub.f32 %v2484_v34, %v520_v1  ;;  %1921 = vmatmul.mubr.msk.bf16.gmra.mxu1 %vm451_vm2, %v811_v35  ;;  %v686_v45 = vsel %vm451_vm2, %v2607_v58, 0.0 }
 0x221   :  { %v2070_v53 = vpop.eup %2069  ;;  %1945 = vmatpush3.bf16.msra.mxu1 %v2025_v54  ;;  %2083 = vpow2.f32 %v620_v50 }
 0x222   :  { %v2072_v56 = vpop.eup %2071  ;;  %v622_v57 = vmul.f32 1.442695, %v569_v14  ;;  %v695_v42 = vsel %vm451_vm2, %v2070_v53, 0.0  ;;  %v812_v55 = vpack.c.bf16 %v2070_v53, %v2068_v44  ;;  %v624_v12 = vmul.f32 1.442695, %v570_v61  ;;  %1946 = vmatprep.subr.bf16.mxu1 %v2026_v9  ;;  %v2027_v53 = vld [vmem:[%s2877_s6 + $0x8] sm:$0xff]  }
 0x223   :  { %696 = vadd.xlane.f32.xlu0 %v695_v42  ;;  %v523_v18 = vpop.xlane.xlu0 %522  ;;  %v698_v15 = vsel %vm451_vm2, %v2072_v56, 0.0  ;;  %v538_v63 = vpop.xlane.xlu1 %537  ;;  %1956 = vmatprep.subr.bf16.mxu0 %v2027_v53  ;;  %v2030_v42 = vld [vmem:[%s2878_s5] sm:$0xff]  }
 0x224   :  { %2085 = vpow2.f32 %v622_v57  ;;  %v571_v27 = vsub.f32 %v2493_v38, %v523_v18  ;;  %699 = vadd.xlane.f32.xlu1 %v698_v15  ;;  %v576_v34 = vsub.f32 %v2496_v59, %v538_v63  ;;  %1932 = vmatprep.mubr.msk.bf16.mxu0 %vm451_vm2, %v812_v55  ;;  %v2029_v57 = vld [vmem:[%s2877_s6] sm:$0xff]   ;;  %v2180_v55 = vld [vmem:[%s2872_s1 + $0x8] sm:$0xff]   ;;  %v2182_v18 = vld [vmem:[%s2872_s1 + $0x18] sm:$0xff]  }
 0x225   :  { %v2074_v0 = vpop.eup %2073  ;;  %1947 = vmatpush3.bf16.msra.mxu1 %v2026_v9  ;;  %2087 = vpow2.f32 %v624_v12  ;;  %v2181_v12 = vld [vmem:[%s2872_s1 + $0x10] sm:$0xff]  }
 0x226   :  { %v2076_v4 = vpop.eup %2075  ;;  %v626_v33 = vmul.f32 1.442695, %v571_v27  ;;  %v701_v5 = vsel %vm451_vm2, %v2074_v0, 0.0  ;;  %v813_v30 = vpack.c.bf16 %v2074_v0, %v2072_v56  ;;  %v636_v51 = vmul.f32 1.442695, %v576_v34  ;;  %v2028_v56 = vld [vmem:[%s2878_s5 + $0x8] sm:$0xff]  }
 0x227   :  { %702 = vadd.xlane.f32.xlu0 %v701_v5  ;;  %v541_v11 = vpop.xlane.xlu0 %540  ;;  %v716_v17 = vsel %vm451_vm2, %v2076_v4, 0.0  ;;  %v544_v8 = vpop.xlane.xlu1 %543  ;;  %1968 = vmatprep.subr.bf16.mxu1 %v2028_v56 }
 0x228   :  { %2089 = vpow2.f32 %v626_v33  ;;  %v577_v38 = vsub.f32 %v2506_v7, %v541_v11  ;;  %717 = vadd.xlane.f32.xlu1 %v716_v17  ;;  %v578_v59 = vsub.f32 %v2509_v2, %v544_v8  ;;  %1933 = vmatmul.mubr.msk.bf16.vlgmr.msra.gmra.mxu0 %vm451_vm2, %v813_v30 }
 0x229   :  { %v2078_v43 = vpop.eup %2077  ;;  %2091 = vpow2.f32 %v636_v51  ;;  %1957 = vmatpush3.bf16.msra.mxu0 %v2027_v53 }
 0x22a   :  { %v2080_v46 = vpop.eup %2079  ;;  %v638_v13 = vmul.f32 1.442695, %v577_v38  ;;  %v719_v19 = vsel %vm451_vm2, %v2078_v43, 0.0  ;;  %v816_v47 = vpack.c.bf16 %v2078_v43, %v2076_v4  ;;  %v640_v20 = vmul.f32 1.442695, %v578_v59  ;;  %1958 = vmatprep.subr.bf16.mxu0 %v2029_v57 }
 0x22b   :  { %720 = vadd.xlane.f32.xlu0 %v719_v19  ;;  %v547_v25 = vpop.xlane.xlu0 %546  ;;  %v722_v22 = vsel %vm451_vm2, %v2080_v46, 0.0 }
 0x22c   :  { %2093 = vpow2.f32 %v638_v13  ;;  %v579_v7 = vsub.f32 %v2519_v10, %v547_v25  ;;  %723 = vadd.xlane.f32.xlu1 %v722_v22  ;;  %1948 = vmatprep.mubr.msk.bf16.mxu1 %vm451_vm2, %v816_v47  ;;  %v659_v10 = vsel %vm451_vm2, %v2556_v31, 0.0 }
 0x22d   :  { %v2082_v2 = vpop.eup %2081  ;;  %2095 = vpow2.f32 %v640_v20  ;;  %1959 = vmatpush3.bf16.msra.mxu0 %v2029_v57 }
 0x22e   :  { %v817_v60 = vpack.c.bf16 %v2082_v2, %v2080_v46  ;;  %v642_v32 = vmul.f32 1.442695, %v579_v7  ;;  %v725_v29 = vsel %vm451_vm2, %v2082_v2, 0.0  ;;  %v2084_v6 = vpop.eup %2083 }
 0x22f   :  { %726 = vadd.xlane.f32.xlu0 %v725_v29  ;;  %v704_v48 = vsel %vm451_vm2, %v2084_v6, 0.0 }
 0x230   :  { %2097 = vpow2.f32 %v642_v32  ;;  %657 = vadd.xlane.f32.xlu1 %v656_v23  ;;  %1949 = vmatmul.mubr.msk.bf16.vlgmr.msra.gmra.mxu1 %vm451_vm2, %v817_v60 }
 0x231   :  { %v2086_v24 = vpop.eup %2085  ;;  %1969 = vmatpush3.bf16.msra.mxu1 %v2028_v56 }
 0x232   :  { %v814_v26 = vpack.c.bf16 %v2086_v24, %v2084_v6  ;;  %v2088_v16 = vpop.eup %2087  ;;  %v707_v58 = vsel %vm451_vm2, %v2086_v24, 0.0  ;;  %1970 = vmatprep.subr.bf16.mxu1 %v2030_v42 }
 0x233   :  { %660 = vadd.xlane.f32.xlu0 %v659_v10  ;;  %v710_v49 = vsel %vm451_vm2, %v2088_v16, 0.0 }
 0x234   :  { %681 = vadd.xlane.f32.xlu1 %v680_v62  ;;  %1936 = vmatprep.mubr.msk.bf16.mxu0 %vm451_vm2, %v814_v26 }
 0x235   :  { %v2090_v21 = vpop.eup %2089  ;;  %1971 = vmatpush3.bf16.msra.mxu1 %v2030_v42 }
 0x236   :  { %v815_v54 = vpack.c.bf16 %v2090_v21, %v2088_v16  ;;  %v2092_v39 = vpop.eup %2091  ;;  %v713_v40 = vsel %vm451_vm2, %v2090_v21, 0.0 }
 0x237   :  { %684 = vadd.xlane.f32.xlu0 %v683_v28  ;;  %v728_v1 = vsel %vm451_vm2, %v2092_v39, 0.0 }
 0x238   :  { %663 = vadd.xlane.f32.xlu1 %v662_v36  ;;  %1937 = vmatmul.mubr.msk.bf16.gmra.mxu0 %vm451_vm2, %v815_v54 }
 0x239   :  { %v2094_v31 = vpop.eup %2093 }
 0x23a   :  { %v818_v44 = vpack.c.bf16 %v2094_v31, %v2092_v39  ;;  %v2096_v35 = vpop.eup %2095  ;;  %v731_v9 = vsel %vm451_vm2, %v2094_v31, 0.0 }
 0x23b   :  { %666 = vadd.xlane.f32.xlu0 %v665_v37  ;;  %v734_v14 = vsel %vm451_vm2, %v2096_v35, 0.0 }
 0x23c   :  { %687 = vadd.xlane.f32.xlu1 %v686_v45  ;;  %1952 = vmatprep.mubr.msk.bf16.mxu1 %vm451_vm2, %v818_v44 }
 0x23d   :  { %v2098_v3 = vpop.eup %2097 }
 0x23e   :  { %v819_v50 = vpack.c.bf16 %v2098_v3, %v2096_v35  ;;  %v737_v61 = vsel %vm451_vm2, %v2098_v3, 0.0 }
 0x23f   :  { %690 = vadd.xlane.f32.xlu0 %v689_v52 }
 0x240   :  { %705 = vadd.xlane.f32.xlu1 %v704_v48  ;;  %1953 = vmatmul.mubr.msk.bf16.gmra.mxu1 %vm451_vm2, %v819_v50 }
 0x241   :  { %1972 = vmatprep.mubr.msk.bf16.mxu1 %vm66_vm0, %v2179_v41 }
 0x243   :  { %708 = vadd.xlane.f32.xlu0 %v707_v58 }
 0x244   :  { %711 = vadd.xlane.f32.xlu1 %v710_v49 }
 0x247   :  { %714 = vadd.xlane.f32.xlu0 %v713_v40 }
 0x248   :  { %729 = vadd.xlane.f32.xlu1 %v728_v1  ;;  %1973 = vmatmul.mubr.msk.bf16.vlgmr.msra.gmra.mxu1 %vm66_vm0, %v2180_v55 }
 0x249   :  { %1976 = vmatprep.mubr.msk.bf16.mxu1 %vm66_vm0, %v2181_v12 }
 0x24b   :  { %732 = vadd.xlane.f32.xlu0 %v731_v9 }
 0x24c   :  { %735 = vadd.xlane.f32.xlu1 %v734_v14 }
 0x24f   :  { %738 = vadd.xlane.f32.xlu0 %v737_v61 }
 0x250   :  { %1977 = vmatmul.mubr.msk.bf16.gmra.mxu1 %vm66_vm0, %v2182_v18 }
 0x288   :  { %v646_v63 = vpop.xlane.xlu1 %645 }
 0x289   :  { %v740_v32 = vmax.f32 %v646_v63, 1e-30 }
 0x28b   :  { %2099 = vrcp.f32 %v740_v32 }
 0x28c   :  { %v649_v15 = vpop.xlane.xlu0 %648 }
 0x28d   :  { %v741_v6 = vmax.f32 %v649_v15, 1e-30 }
 0x28f   :  { %2101 = vrcp.f32 %v741_v6 }
 0x298   :  { %v2100_v53 = vpop.eup %2099 }
 0x299   :  { %v670_v34 = vpop.xlane.xlu1 %669 }
 0x29a   :  { %v748_v24 = vmax.f32 %v670_v34, 1e-30 }
 0x29c   :  { %v673_v27 = vpop.xlane.xlu0 %672  ;;  %2103 = vrcp.f32 %v748_v24  ;;  %v2102_v57 = vpop.eup %2101 }
 0x29d   :  { %v652_v4 = vpop.xlane.xlu1 %651  ;;  %v749_v26 = vmax.f32 %v673_v27, 1e-30 }
 0x29e   :  { %v742_v62 = vmax.f32 %v652_v4, 1e-30 }
 0x29f   :  { %2105 = vrcp.f32 %v749_v26 }
 0x2a0   :  { %v655_v0 = vpop.xlane.xlu0 %654  ;;  %2107 = vrcp.f32 %v742_v62 }
 0x2a1   :  { %v676_v5 = vpop.xlane.xlu1 %675  ;;  %v743_v28 = vmax.f32 %v655_v0, 1e-30 }
 0x2a2   :  { %v750_v54 = vmax.f32 %v676_v5, 1e-30 }
 0x2a3   :  { %2109 = vrcp.f32 %v743_v28 }
 0x2a4   :  { %v679_v33 = vpop.xlane.xlu0 %678  ;;  %2111 = vrcp.f32 %v750_v54 }
 0x2a5   :  { %v751_v31 = vmax.f32 %v679_v33, 1e-30 }
 0x2a7   :  { %2113 = vrcp.f32 %v751_v31 }
 0x2a9   :  { %v694_v51 = vpop.xlane.xlu1 %693  ;;  %v2104_v12 = vpop.eup %2103 }
 0x2aa   :  { %v756_v37 = vmax.f32 %v694_v51, 1e-30 }
 0x2ac   :  { %v697_v30 = vpop.xlane.xlu0 %696  ;;  %2115 = vrcp.f32 %v756_v37  ;;  %v2106_v63 = vpop.eup %2105 }
 0x2ad   :  { %v700_v17 = vpop.xlane.xlu1 %699  ;;  %v757_v45 = vmax.f32 %v697_v30, 1e-30  ;;  %v2108_v34 = vpop.eup %2107 }
 0x2ae   :  { %v758_v35 = vmax.f32 %v700_v17, 1e-30 }
 0x2af   :  { %2117 = vrcp.f32 %v757_v45 }
 0x2b0   :  { %v703_v11 = vpop.xlane.xlu0 %702  ;;  %2119 = vrcp.f32 %v758_v35  ;;  %v2110_v33 = vpop.eup %2109 }
 0x2b1   :  { %v718_v38 = vpop.xlane.xlu1 %717  ;;  %v759_v50 = vmax.f32 %v703_v11, 1e-30  ;;  %v2112_v51 = vpop.eup %2111 }
 0x2b2   :  { %v764_v48 = vmax.f32 %v718_v38, 1e-30 }
 0x2b3   :  { %2121 = vrcp.f32 %v759_v50 }
 0x2b4   :  { %v721_v8 = vpop.xlane.xlu0 %720  ;;  %2123 = vrcp.f32 %v764_v48  ;;  %v2114_v38 = vpop.eup %2113 }
 0x2b5   :  { %v724_v43 = vpop.xlane.xlu1 %723  ;;  %v765_v49 = vmax.f32 %v721_v8, 1e-30 }
 0x2b6   :  { %v766_v40 = vmax.f32 %v724_v43, 1e-30 }
 0x2b7   :  { %2125 = vrcp.f32 %v765_v49 }
 0x2b8   :  { %v2695_v59 = vpop.xlane.xlu0 %726  ;;  %2127 = vrcp.f32 %v766_v40 }
 0x2b9   :  { %v2699_v13 = vpop.xlane.xlu1 %657  ;;  %v767_v1 = vmax.f32 %v2695_v59, 1e-30 }
 0x2ba   :  { %v744_v14 = vmax.f32 %v2699_v13, 1e-30 }
 0x2bb   :  { %2129 = vrcp.f32 %v767_v1 }
 0x2bc   :  { %v2697_v46 = vpop.xlane.xlu0 %660  ;;  %2131 = vrcp.f32 %v744_v14 }
 0x2bd   :  { %v2707_v25 = vpop.xlane.xlu1 %681  ;;  %v745_v56 = vmax.f32 %v2697_v46, 1e-30  ;;  %v2116_v46 = vpop.eup %2115 }
 0x2be   :  { %v752_v42 = vmax.f32 %v2707_v25, 1e-30  ;;  %v2118_v25 = vpop.eup %2117 }
 0x2bf   :  { %2133 = vrcp.f32 %v745_v56  ;;  %v2120_v32 = vpop.eup %2119 }
 0x2c0   :  { %v2703_v47 = vpop.xlane.xlu0 %684  ;;  %2135 = vrcp.f32 %v752_v42  ;;  %v2122_v6 = vpop.eup %2121 }
 0x2c1   :  { %v2717_v29 = vpop.xlane.xlu1 %663  ;;  %v753_v18 = vmax.f32 %v2703_v47, 1e-30  ;;  %v2124_v62 = vpop.eup %2123 }
 0x2c2   :  { %v746_v27 = vmax.f32 %v2717_v29, 1e-30 }
 0x2c3   :  { %2137 = vrcp.f32 %v753_v18 }
 0x2c4   :  { %v2713_v2 = vpop.xlane.xlu0 %666  ;;  %2139 = vrcp.f32 %v746_v27  ;;  %v2126_v37 = vpop.eup %2125 }
 0x2c5   :  { %v2727_v36 = vpop.xlane.xlu1 %687  ;;  %v747_v0 = vmax.f32 %v2713_v2, 1e-30  ;;  %v2128_v48 = vpop.eup %2127 }
 0x2c6   :  { %v754_v5 = vmax.f32 %v2727_v36, 1e-30 }
 0x2c7   :  { %2141 = vrcp.f32 %v747_v0 }
 0x2c8   :  { %v2701_v19 = vpop.f32.mrf.mxu1  ;;  %v2723_v16 = vpop.xlane.xlu0 %690  ;;  %2143 = vrcp.f32 %v754_v5 }
 0x2c9   :  { %v706_v41 = vpop.xlane.xlu1 %705  ;;  %v755_v11 = vmax.f32 %v2723_v16, 1e-30  ;;  %v931_v16 = vmul.f32 %v2108_v34, %v2701_v19 }
 0x2ca   :  { %v2705_v20 = vpop.f32.mrf.mxu1  ;;  %v760_v59 = vmax.f32 %v706_v41, 1e-30 }
 0x2cb   :  { %2145 = vrcp.f32 %v755_v11  ;;  %v929_v28 = vmul.f32 %v2100_v53, %v2705_v20 }
 0x2cc   :  { %v2709_v22 = vpop.f32.mrf.mxu1  ;;  %v2733_v3 = vpop.xlane.xlu0 %708  ;;  %2147 = vrcp.f32 %v760_v59 }
 0x2cd   :  { %v712_v55 = vpop.xlane.xlu1 %711  ;;  %v761_v13 = vmax.f32 %v2733_v3, 1e-30  ;;  %v932_v45 = vmul.f32 %v2110_v33, %v2709_v22 }
 0x2ce   :  { %v2711_v7 = vpop.f32.mrf.mxu1  ;;  %v762_v2 = vmax.f32 %v712_v55, 1e-30 }
 0x2cf   :  { %2149 = vrcp.f32 %v761_v13  ;;  %v930_v41 = vmul.f32 %v2102_v57, %v2711_v7 }
 0x2d0   :  { %v2715_v60 = vpop.f32.mrf.mxu1  ;;  %v2743_v61 = vpop.xlane.xlu0 %714  ;;  %2151 = vrcp.f32 %v762_v2 }
 0x2d1   :  { %v730_v43 = vpop.xlane.xlu1 %729  ;;  %v763_v24 = vmax.f32 %v2743_v61, 1e-30 }
 0x2d2   :  { %v2719_v23 = vpop.f32.mrf.mxu1  ;;  %v768_v19 = vmax.f32 %v730_v43, 1e-30 }
 0x2d3   :  { %2153 = vrcp.f32 %v763_v24 }
 0x2d4   :  { %v2721_v10 = vpop.f32.mrf.mxu1  ;;  %v2753_v30 = vpop.xlane.xlu0 %732  ;;  %2155 = vrcp.f32 %v768_v19 }
 0x2d5   :  { %v736_v35 = vpop.xlane.xlu1 %735  ;;  %v769_v53 = vmax.f32 %v2753_v30, 1e-30 }
 0x2d6   :  { %v2725_v21 = vpop.f32.mrf.mxu1  ;;  %v770_v56 = vmax.f32 %v736_v35, 1e-30 }
 0x2d8   :  { %v2729_v39 = vpop.f32.mrf.mxu1  ;;  %v739_v26 = vpop.xlane.xlu0 %738 }
 0x2d9   :  { %v1057_v20 = vmul.f32 %v2112_v51, %v2729_v39  ;;  %v771_v1 = vmax.f32 %v739_v26, 1e-30 }
 0x2da   :  { %v2731_v44 = vpop.f32.mrf.mxu1 }
 0x2db   :  { %v1055_v3 = vmul.f32 %v2104_v12, %v2731_v44  ;;  %2157 = vrcp.f32 %v771_v1 }
 0x2dc   :  { %v2735_v52 = vpop.f32.mrf.mxu1  ;;  %2159 = vrcp.f32 %v770_v56 }
 0x2dd   :  { %v1058_v54 = vmul.f32 %v2114_v38, %v2735_v52  ;;  %v2130_v52 = vpop.eup %2129  ;;  %v1063_v12 = vadd.f32 %v1055_v3, %v929_v28  ;;  %2161 = vrcp.f32 %v769_v53 }
 0x2de   :  { %v2737_v58 = vpop.f32.mrf.mxu1  ;;  %v2132_v22 = vpop.eup %2131 }
 0x2df   :  { %v1056_v50 = vmul.f32 %v2106_v63, %v2737_v58  ;;  %v1066_v44 = vadd.f32 %v1058_v54, %v932_v45  ;;  %v2134_v55 = vpop.eup %2133  ;;  %v1065_v63 = vadd.f32 %v1057_v20, %v931_v16  ;;  %v933_v19 = vmul.f32 %v2132_v22, %v2719_v23 }
 0x2e0   :  { %v2740_v9 = vpop.f32.mrf.mxu1  ;;  %v2136_v39 = vpop.eup %2135  ;;  %v934_v20 = vmul.f32 %v2134_v55, %v2725_v21 }
 0x2e1   :  { %v1064_v7 = vadd.f32 %v1056_v50, %v930_v41  ;;  %v2138_v33 = vpop.eup %2137 }
 0x2e2   :  { %v2748_v15 = vpop.f32.mrf.mxu1  ;;  %v2140_v11 = vpop.eup %2139 }
 0x2e3   :  { %v2142_v59 = vpop.eup %2141 }
 0x2e4   :  { %v2756_v17 = vpop.f32.mrf.mxu1  ;;  %v2144_v13 = vpop.eup %2143  ;;  %v936_v35 = vmul.f32 %v2142_v59, %v2721_v10 }
 0x2e5   :  { %v2146_v2 = vpop.eup %2145  ;;  %v1061_v3 = vmul.f32 %v2144_v13, %v2740_v9 }
 0x2e6   :  { %v2759_v29 = vpop.f32.mrf.mxu1  ;;  %v1062_v54 = vmul.f32 %v2146_v2, %v2756_v17 }
 0x2e7   :  { %v1060_v45 = vmul.f32 %v2138_v33, %v2759_v29  ;;  %v2034_v33 = vld [vmem:[%s2879_s8] sm:$0xff]  }
 0x2e8   :  { %v1934_v4 = vpop.f32.mrf.mxu0  ;;  %v1070_v1 = vadd.f32 %v1062_v54, %v936_v35 }
 0x2e9   :  { %v1183_v42 = vmul.f32 %v2120_v32, %v1934_v4  ;;  %v1068_v10 = vadd.f32 %v1060_v45, %v934_v20 }
 0x2ea   :  { %v1150_v8 = vpop.f32.mrf.mxu0 }
 0x2eb   :  { %v1181_v14 = vmul.f32 %v2116_v46, %v1150_v8  ;;  %v1191_v4 = vadd.f32 %v1183_v42, %v1065_v63 }
 0x2ec   :  { %v1935_v47 = vpop.f32.mrf.mxu0 }
 0x2ed   :  { %v1184_v49 = vmul.f32 %v2122_v6, %v1935_v47  ;;  %v1189_v5 = vadd.f32 %v1181_v14, %v1063_v12  ;;  %v2148_v6 = vpop.eup %2147 }
 0x2ee   :  { %v1153_v36 = vpop.f32.mrf.mxu0 }
 0x2ef   :  { %v1182_v61 = vmul.f32 %v2118_v25, %v1153_v36  ;;  %v1192_v27 = vadd.f32 %v1184_v49, %v1066_v44 }
 0x2f0   :  { %v1950_v31 = vpop.f32.mrf.mxu1 }
 0x2f1   :  { %v1309_v34 = vmul.f32 %v2128_v48, %v1950_v31  ;;  %v1190_v51 = vadd.f32 %v1182_v61, %v1064_v7 }
 0x2f2   :  { %v1276_v40 = vpop.f32.mrf.mxu1 }
 0x2f3   :  { %v1307_v57 = vmul.f32 %v2124_v62, %v1276_v40  ;;  %v1317_v47 = vadd.f32 %v1309_v34, %v1191_v4  ;;  %v2150_v62 = vpop.eup %2149  ;;  %v2032_v34 = vld [vmem:[%s2879_s8 + $0x10] sm:$0xff]  }
 0x2f4   :  { %v1951_v58 = vpop.f32.mrf.mxu1  ;;  %v2152_v16 = vpop.eup %2151 }
 0x2f5   :  { %v1310_v18 = vmul.f32 %v2130_v52, %v1951_v58  ;;  %v1315_v43 = vadd.f32 %v1307_v57, %v1189_v5  ;;  %v2154_v28 = vpop.eup %2153  ;;  %v935_v52 = vmul.f32 %v2140_v11, %v2715_v60  ;;  %v1794_v11 = vld [vmem:[%s2880_s7] ss:$0 sm:$0xff] }
 0x2f6   :  { %v1279_v0 = vpop.f32.mrf.mxu1  ;;  %v2156_v41 = vpop.eup %2155 }
 0x2f7   :  { %v1308_v30 = vmul.f32 %v2126_v37, %v1279_v0  ;;  %v1318_v8 = vadd.f32 %v1310_v18, %v1192_v27  ;;  %v1059_v37 = vmul.f32 %v2136_v39, %v2748_v15  ;;  %v2158_v17 = vpop.eup %2157  ;;  %v1069_v44 = vadd.f32 %v1061_v3, %v935_v52  ;;  %v2031_v27 = vld [vmem:[%s2879_s8 + $0x18] sm:$0xff]   ;;  %v2033_v0 = vld [vmem:[%s2879_s8 + $0x8] sm:$0xff]  }
 0x2f8   :  { %v1938_v38 = vpop.f32.mrf.mxu0  ;;  %v2160_v29 = vpop.eup %2159  ;;  %1980 = vmatprep.subr.bf16.mxu0 %v2031_v27  ;;  %1996 = vmatprep.subr.bf16.mxu1 %v2031_v27 }
 0x2f9   :  { %v1316_v46 = vadd.f32 %v1308_v30, %v1190_v51  ;;  %v1328_v24 = vpack.c.bf16 %v1318_v8, %v1317_v47  ;;  %v1187_v15 = vmul.f32 %v2152_v16, %v1938_v38  ;;  %v1067_v61 = vadd.f32 %v1059_v37, %v933_v19  ;;  %v2162_v56 = vpop.eup %2161  ;;  %2000 = vmatpush3.bf16.msra.mxu1 %v2031_v27 }
 0x2fa   :  { %v1166_v25 = vpop.f32.mrf.mxu0  ;;  %1997 = vmatprep.subr.bf16.mxu1 %v2032_v34 }
 0x2fb   :  { %v1327_v32 = vpack.c.bf16 %v1316_v46, %v1315_v43  ;;  %v1185_v49 = vmul.f32 %v2148_v6, %v1166_v25  ;;  %v1195_v12 = vadd.f32 %v1187_v15, %v1069_v44 }
 0x2fc   :  { %v1939_v26 = vpop.f32.mrf.mxu0 }
 0x2fd   :  { %1960 = vmatprep.mubr.msk.bf16.mxu0 %vm66_vm0, %v1327_v32  ;;  %v1188_v50 = vmul.f32 %v2154_v28, %v1939_v26  ;;  %v1193_v22 = vadd.f32 %v1185_v49, %v1067_v61  ;;  %2001 = vmatpush3.bf16.msra.mxu1 %v2032_v34 }
 0x2fe   :  { %1961 = vmatmul.mubr.msk.bf16.vlgmr.msra.gmra.mxu0 %vm66_vm0, %v1328_v24  ;;  %v1169_v36 = vpop.f32.mrf.mxu0  ;;  %1998 = vmatprep.subr.bf16.mxu1 %v2033_v0 }
 0x2ff   :  { %v1186_v40 = vmul.f32 %v2150_v62, %v1169_v36  ;;  %v1196_v42 = vadd.f32 %v1188_v50, %v1070_v1  ;;  %1981 = vmatpush3.bf16.msra.mxu0 %v2031_v27 }
 0x300   :  { %v1954_v31 = vpop.f32.mrf.mxu1  ;;  %1982 = vmatprep.subr.bf16.mxu0 %v2032_v34 }
 0x301   :  { %v1313_v58 = vmul.f32 %v2160_v29, %v1954_v31  ;;  %v1194_v21 = vadd.f32 %v1186_v40, %v1068_v10  ;;  %2002 = vmatpush3.bf16.msra.mxu1 %v2033_v0 }
 0x302   :  { %v1292_v48 = vpop.f32.mrf.mxu1  ;;  %1999 = vmatprep.subr.bf16.mxu1 %v2034_v33 }
 0x303   :  { %v1311_v53 = vmul.f32 %v2156_v41, %v1292_v48  ;;  %v1321_v18 = vadd.f32 %v1313_v58, %v1195_v12  ;;  %1983 = vmatpush3.bf16.msra.mxu0 %v2032_v34 }
 0x304   :  { %v1955_v14 = vpop.f32.mrf.mxu1  ;;  %1984 = vmatprep.subr.bf16.mxu0 %v2033_v0 }
 0x305   :  { %v1314_v9 = vmul.f32 %v2158_v17, %v1955_v14  ;;  %v1319_v57 = vadd.f32 %v1311_v53, %v1193_v22  ;;  %2003 = vmatpush3.bf16.msra.mxu1 %v2034_v33 }
 0x306   :  { %v1295_v23 = vpop.f32.mrf.mxu1 }
 0x307   :  { %v1312_v55 = vmul.f32 %v2162_v56, %v1295_v23  ;;  %v1322_v7 = vadd.f32 %v1314_v9, %v1196_v42  ;;  %1985 = vmatpush3.bf16.msra.mxu0 %v2033_v0 }
 0x308   :  { %1986 = vmatprep.subr.bf16.mxu0 %v2034_v33  ;;  %v1974_v5 = vpop.f32.mrf.mxu1 }
 0x309   :  { %v1320_v60 = vadd.f32 %v1312_v55, %v1194_v21  ;;  %v1330_v63 = vpack.c.bf16 %v1322_v7, %v1321_v18 }
 0x30a   :  { %v1470_v51 = vpop.f32.mrf.mxu1 }
 0x30b   :  { %v1329_v39 = vpack.c.bf16 %v1320_v60, %v1319_v57  ;;  %1987 = vmatpush3.bf16.msra.mxu0 %v2034_v33 }
 0x30c   :  { %v1975_v4 = vpop.f32.mrf.mxu1 }
 0x30d   :  { %1964 = vmatprep.mubr.msk.bf16.mxu0 %vm66_vm0, %v1329_v39 }
 0x30e   :  { %1965 = vmatmul.mubr.msk.bf16.gmra.mxu0 %vm66_vm0, %v1330_v63  ;;  %v1473_v13 = vpop.f32.mrf.mxu1 }
 0x310   :  { %v1978_v31 = vpop.f32.mrf.mxu1 }
 0x312   :  { %v1486_v20 = vpop.f32.mrf.mxu1 }
 0x314   :  { %v1979_v29 = vpop.f32.mrf.mxu1 }
 0x316   :  { %v1489_v23 = vpop.f32.mrf.mxu1 }
 0x3be   :  { %v1962_v30 = vpop.f32.mrf.mxu0 }
 0x3bf   :  { %v1479_v8 = vadd.f32 %v1974_v5, %v1962_v30 }
 0x3c0   :  { %v1393_v38 = vpop.f32.mrf.mxu0 }
 0x3c1   :  { %v2798_v59 = vadd.f32 %v1794_v11, %v1479_v8  ;;  %v1471_v43 = vadd.f32 %v1470_v51, %v1393_v38 }
 0x3c2   :  { %v1963_v46 = vpop.f32.mrf.mxu0 }
 0x3c3   :  { %v1526_v47 = vmul.f32 0.044715, %v2798_v59  ;;  %v2801_v25 = vadd.f32 %v1794_v11, %v1471_v43  ;;  %v1482_v2 = vadd.f32 %v1975_v4, %v1963_v46 }
 0x3c4   :  { %v1396_v32 = vpop.f32.mrf.mxu0 }
 0x3c5   :  { %v1534_v6 = vmul.f32 %v1526_v47, %v2798_v59  ;;  %v1524_v24 = vmul.f32 0.044715, %v2801_v25  ;;  %v2805_v26 = vadd.f32 %v1794_v11, %v1482_v2  ;;  %v1474_v62 = vadd.f32 %v1473_v13, %v1396_v32 }
 0x3c7   :  { %v1542_v16 = vmul.f32 %v1534_v6, %v2798_v59  ;;  %v1532_v28 = vmul.f32 %v1524_v24, %v2801_v25  ;;  %v1527_v54 = vmul.f32 0.044715, %v2805_v26  ;;  %v2810_v36 = vadd.f32 %v1794_v11, %v1474_v62 }
 0x3c8   :  { %v1519_v62 = vmul.f32 0.5, %v2805_v26 }
 0x3c9   :  { %v1550_v37 = vadd.f32 %v1542_v16, %v2798_v59  ;;  %v1540_v45 = vmul.f32 %v1532_v28, %v2801_v25  ;;  %v1535_v35 = vmul.f32 %v1527_v54, %v2805_v26  ;;  %v1525_v3 = vmul.f32 0.044715, %v2810_v36 }
 0x3ca   :  { %v1516_v16 = vmul.f32 0.5, %v2801_v25  ;;  %v1517_v28 = vmul.f32 0.5, %v2810_v36 }
 0x3cb   :  { %v1558_v50 = vmul.f32 0.7978846, %v1550_v37  ;;  %v1548_v48 = vadd.f32 %v1540_v45, %v2801_v25  ;;  %v1543_v41 = vmul.f32 %v1535_v35, %v2805_v26  ;;  %v1533_v19 = vmul.f32 %v1525_v3, %v2810_v36 }
 0x3cc   :  { %v1518_v37 = vmul.f32 0.5, %v2798_v59 }
 0x3cd   :  { %v1551_v49 = vadd.f32 %v1543_v41, %v2805_v26  ;;  %v1556_v40 = vmul.f32 0.7978846, %v1548_v48  ;;  %v1541_v17 = vmul.f32 %v1533_v19, %v2810_v36  ;;  %2163 = vtanh.f32 %v1558_v50 }
 0x3ce   :  { %v1966_v52 = vpop.f32.mrf.mxu0 }
 0x3cf   :  { %v1559_v1 = vmul.f32 0.7978846, %v1551_v49  ;;  %v1495_v15 = vadd.f32 %v1978_v31, %v1966_v52  ;;  %v1549_v14 = vadd.f32 %v1541_v17, %v2810_v36  ;;  %2165 = vtanh.f32 %v1556_v40 }
 0x3d0   :  { %v1409_v61 = vpop.f32.mrf.mxu0 }
 0x3d1   :  { %2167 = vtanh.f32 %v1559_v1  ;;  %v2822_v10 = vadd.f32 %v1794_v11, %v1495_v15  ;;  %v1487_v53 = vadd.f32 %v1486_v20, %v1409_v61  ;;  %v1557_v56 = vmul.f32 0.7978846, %v1549_v14 }
 0x3d2   :  { %v1967_v9 = vpop.f32.mrf.mxu0 }
 0x3d3   :  { %v1530_v44 = vmul.f32 0.044715, %v2822_v10  ;;  %v1512_v42 = vadd.f32 %v1794_v11, %v1487_v53  ;;  %v1498_v58 = vadd.f32 %v1979_v29, %v1967_v9  ;;  %2169 = vtanh.f32 %v1557_v56 }
 0x3d4   :  { %v1412_v22 = vpop.f32.mrf.mxu0  ;;  %v1522_v15 = vmul.f32 0.5, %v2822_v10 }
 0x3d5   :  { %v1538_v21 = vmul.f32 %v1530_v44, %v2822_v10  ;;  %v1528_v55 = vmul.f32 0.044715, %v1512_v42  ;;  %v1515_v12 = vadd.f32 %v1794_v11, %v1498_v58  ;;  %v1490_v7 = vadd.f32 %v1489_v23, %v1412_v22  ;;  %v1795_v44 = vld [vmem:[%s2881_s9] ss:$0 sm:$0xff] }
 0x3d6   :  { %v1520_v59 = vmul.f32 0.5, %v1512_v42 }
 0x3d7   :  { %v1546_v57 = vmul.f32 %v1538_v21, %v2822_v10  ;;  %v1536_v60 = vmul.f32 %v1528_v55, %v1512_v42  ;;  %v1531_v18 = vmul.f32 0.044715, %v1515_v12  ;;  %v1513_v39 = vadd.f32 %v1794_v11, %v1490_v7 }
 0x3d8   :  { %v1523_v17 = vmul.f32 0.5, %v1515_v12 }
 0x3d9   :  { %v1554_v63 = vadd.f32 %v1546_v57, %v2822_v10  ;;  %v1544_v27 = vmul.f32 %v1536_v60, %v1512_v42  ;;  %v1539_v34 = vmul.f32 %v1531_v18, %v1515_v12  ;;  %v1529_v0 = vmul.f32 0.044715, %v1513_v39 }
 0x3da   :  { %v2164_v30 = vpop.eup %2163  ;;  %v1521_v52 = vmul.f32 0.5, %v1513_v39 }
 0x3db   :  { %v1562_v33 = vmul.f32 0.7978846, %v1554_v63  ;;  %v1552_v5 = vadd.f32 %v1544_v27, %v1512_v42  ;;  %v1547_v51 = vmul.f32 %v1539_v34, %v1515_v12  ;;  %v1537_v4 = vmul.f32 %v1529_v0, %v1513_v39 }
 0x3dc   :  { %v2166_v8 = vpop.eup %2165  ;;  %v1574_v24 = vadd.f32 1.0, %v2164_v30 }
 0x3dd   :  { %v1555_v38 = vadd.f32 %v1547_v51, %v1515_v12  ;;  %v1545_v46 = vmul.f32 %v1537_v4, %v1513_v39  ;;  %v1560_v13 = vmul.f32 0.7978846, %v1552_v5  ;;  %2171 = vtanh.f32 %v1562_v33 }
 0x3de   :  { %v2168_v43 = vpop.eup %2167  ;;  %v1572_v11 = vadd.f32 1.0, %v2166_v8  ;;  %v1582_v50 = vmul.f32 %v1574_v24, %v1518_v37 }
 0x3df   :  { %v1575_v47 = vadd.f32 1.0, %v2168_v43  ;;  %v1563_v2 = vmul.f32 0.7978846, %v1555_v38  ;;  %v1553_v32 = vadd.f32 %v1545_v46, %v1513_v39  ;;  %2173 = vtanh.f32 %v1560_v13 }
 0x3e0   :  { %v2170_v6 = vpop.eup %2169  ;;  %v1580_v35 = vmul.f32 %v1572_v11, %v1516_v16 }
 0x3e1   :  { %2175 = vtanh.f32 %v1563_v2  ;;  %v1573_v54 = vadd.f32 1.0, %v2170_v6  ;;  %v1561_v31 = vmul.f32 0.7978846, %v1553_v32  ;;  %v1583_v45 = vmul.f32 %v1575_v47, %v1519_v62 }
 0x3e3   :  { %v1581_v3 = vmul.f32 %v1573_v54, %v1517_v28  ;;  %2177 = vtanh.f32 %v1561_v31  ;;  %v1589_v41 = vpack.c.bf16 %v1583_v45, %v1582_v50 }
 0x3e5   :  { %v1588_v48 = vpack.c.bf16 %v1581_v3, %v1580_v35 }
 0x3e7   :  { %1988 = vmatprep.mubr.msk.bf16.mxu0 %vm451_vm2, %v1588_v48 }
 0x3e8   :  { %1989 = vmatmul.mubr.msk.bf16.vlgmr.msra.gmra.mxu0 %vm451_vm2, %v1589_v41 }
 0x3ea   :  { %v2172_v26 = vpop.eup %2171 }
 0x3eb   :  { %v1578_v40 = vadd.f32 1.0, %v2172_v26 }
 0x3ec   :  { %v2174_v19 = vpop.eup %2173 }
 0x3ed   :  { %v1576_v36 = vadd.f32 1.0, %v2174_v19  ;;  %v1586_v53 = vmul.f32 %v1578_v40, %v1522_v15 }
 0x3ee   :  { %v2176_v25 = vpop.eup %2175 }
 0x3ef   :  { %v1579_v20 = vadd.f32 1.0, %v2176_v25  ;;  %v1584_v29 = vmul.f32 %v1576_v36, %v1520_v59 }
 0x3f0   :  { %v2178_v49 = vpop.eup %2177 }
 0x3f1   :  { %v1577_v1 = vadd.f32 1.0, %v2178_v49  ;;  %v1587_v14 = vmul.f32 %v1579_v20, %v1523_v17 }
 0x3f3   :  { %v1585_v61 = vmul.f32 %v1577_v1, %v1521_v52  ;;  %v1591_v56 = vpack.c.bf16 %v1587_v14, %v1586_v53 }
 0x3f5   :  { %v1590_v9 = vpack.c.bf16 %v1585_v61, %v1584_v29 }
 0x3f7   :  { %1992 = vmatprep.mubr.msk.bf16.mxu1 %vm451_vm2, %v1590_v9 }
 0x3f8   :  { %1993 = vmatmul.mubr.msk.bf16.vlgmr.msra.gmra.mxu1 %vm451_vm2, %v1591_v56 }
 0x4a8   :  { %v1990_v58 = vpop.f32.mrf.mxu0 }
 0x4a9   :  { %v1686_v42 = vadd.f32 %v1990_v58, %v1795_v44 }
 0x4aa   :  { %v1677_v23 = vpop.f32.mrf.mxu0 }
 0x4ab   :  { %1710 = vst.msk [vmem:[%s2882_s10 + $0x10] sm:$0xff] %vm66_vm0, %v1686_v42  ;;  %v1678_v10 = vadd.f32 %v1795_v44, %v1677_v23 }
 0x4ac   :  { %v1991_v22 = vpop.f32.mrf.mxu0 }
 0x4ad   :  { %1708 = vst.msk [vmem:[%s2882_s10] sm:$0xff] %vm66_vm0, %v1678_v10  ;;  %v1689_v21 = vadd.f32 %v1991_v22, %v1795_v44 }
 0x4ae   :  { %v1680_v55 = vpop.f32.mrf.mxu0 }
 0x4af   :  { %1711 = vst.msk [vmem:[%s2882_s10 + $0x18] sm:$0xff] %vm66_vm0, %v1689_v21  ;;  %v1681_v12 = vadd.f32 %v1795_v44, %v1680_v55 }
 0x4b1   :  { %1709 = vst.msk [vmem:[%s2882_s10 + $0x8] sm:$0xff] %vm66_vm0, %v1681_v12 }
 0x4b8   :  { %v1994_v7 = vpop.f32.mrf.mxu1 }
 0x4b9   :  { %v1702_v57 = vadd.f32 %v1994_v7, %v1795_v44 }
 0x4ba   :  { %v1693_v60 = vpop.f32.mrf.mxu1 }
 0x4bb   :  { %1714 = vst.msk [vmem:[%s2882_s10 + $0x30] sm:$0xff] %vm66_vm0, %v1702_v57  ;;  %v1694_v18 = vadd.f32 %v1795_v44, %v1693_v60 }
 0x4bc   :  { %v1995_v39 = vpop.f32.mrf.mxu1 }
 0x4bd   :  { %1712 = vst.msk [vmem:[%s2882_s10 + $0x20] sm:$0xff] %vm66_vm0, %v1694_v18  ;;  %v1705_v63 = vadd.f32 %v1995_v39, %v1795_v44 }
 0x4be   :  { %v1696_v27 = vpop.f32.mrf.mxu1 }
 0x4bf   :  { %1715 = vst.msk [vmem:[%s2882_s10 + $0x38] sm:$0xff] %vm66_vm0, %v1705_v63  ;;  %v1697_v34 = vadd.f32 %v1795_v44, %v1696_v27 }
 0x4c1   :  { %1713 = vst.msk [vmem:[%s2882_s10 + $0x28] sm:$0xff] %vm66_vm0, %v1697_v34 }

</bundles_post_ra>
